<compile_context>
chip_gen: v7x
topology: tpu7x:2x2x1
jax: 0.10.0
libtpu: 0.0.40
codegen_flags: <defaults>
</compile_context>

<pallas_src>
import functools

import jax
import jax.numpy as jnp
from jax.experimental import pallas as pl
from jax.experimental.pallas import tpu as pltpu

BN_EPS = 1e-5
LANE = 128


def _round_up(x, m):
    return ((x + m - 1) // m) * m


def _vmem_limit_bytes():
    """Per-chip VMEM limit with headroom (100 MiB-ish on v5e/v6e, ~50 MiB on v7x)."""
    cap = 64 * 1024 * 1024
    try:
        info = pltpu.get_tpu_info()
        for name in ("vmem_capacity_bytes", "vmem_bytes", "vmem_size_bytes"):
            v = getattr(info, name, None)
            if v:
                cap = int(v)
                break
    except Exception:
        pass
    return int(min(cap * 0.78, 112 * 1024 * 1024))


def _partial_stats(v):
    """Single-pass per-channel partial stats of a (BN, L, C) f32 tile -> (1, 2, C)."""
    s = jnp.sum(v, axis=(0, 1), keepdims=True)        # (1, 1, C)
    ss = jnp.sum(v * v, axis=(0, 1), keepdims=True)   # (1, 1, C)
    return jnp.concatenate([s, ss], axis=1)           # (1, 2, C)


# --------------------------- Pallas kernels ---------------------------
def _stage_kernel(x_ref, scale_ref, shift_ref, w_ref, *rest, k, apply_relu,
                  emit_input_stats, fuse_residual, matmul_dtype):
    """Fused (previous-stage BN [+ReLU]) -> k-tap 'same' conv as one wide-K GEMM
    (+ optional fused 1x1 residual conv) -> per-tile partial BN statistics."""
    idx = 0
    if fuse_residual:
        w_res_ref = rest[idx]; idx += 1
    y_ref = rest[idx]; idx += 1
    stats_ref = rest[idx]; idx += 1
    if fuse_residual:
        res_ref = rest[idx]; idx += 1
        res_stats_ref = rest[idx]; idx += 1
    if emit_input_stats:
        in_stats_ref = rest[idx]; idx += 1

    # Previous stage's folded batch norm applied on the fly (f32 math).
    h = x_ref[...].astype(jnp.float32) * scale_ref[...] + shift_ref[...]
    if apply_relu:
        h = jnp.maximum(h, 0.0)
    if emit_input_stats:
        # Stats of the (post-affine) input, used for the identity residual's BN.
        in_stats_ref[...] = _partial_stats(h)

    bsz, L, cin_p = h.shape
    cout_p = y_ref.shape[-1]
    p = (k - 1) // 2
    # Hoisted once: output-position index for the edge masks of every tap.
    pos = jax.lax.broadcasted_iota(jnp.int32, (1, L, 1), 1) if k > 1 else None

    taps = []
    for j in range(k):                                  # static, unrolled taps
        d = j - p
        if d == 0:
            v = h
        else:
            # Circular shift along L on the XLU, then zero the wrapped rows so
            # the result matches zero padding (one compare per tap).
            v = pltpu.roll(h, shift=(-d) % L, axis=1)
            if d > 0:
                v = jnp.where(pos < (L - d), v, 0.0)
            else:
                v = jnp.where(pos >= (-d), v, 0.0)
        taps.append(v.astype(matmul_dtype))

    # im2col along the lane axis -> one tall (bn*L, k*cin_p) x (k*cin_p, cout_p)
    # GEMM with f32 accumulation (full contraction depth, explicit large M).
    stacked = taps[0] if k == 1 else jnp.concatenate(taps, axis=-1)
    mat = stacked.reshape(bsz * L, k * cin_p)
    acc = jax.lax.dot_general(mat, w_ref[...], (((1,), (0,)), ((), ())),
                              preferred_element_type=jnp.float32)
    acc = acc.reshape(bsz, L, cout_p)
    y_ref[...] = acc.astype(y_ref.dtype)
    stats_ref[...] = _partial_stats(acc)                # sum / sum-of-squares

    if fuse_residual:
        # Fused 1x1 expansion conv on the (already cast) center tap: avoids a
        # second HBM pass over x and a second pallas_call.
        rmat = taps[p].reshape(bsz * L, cin_p)
        racc = jax.lax.dot_general(rmat, w_res_ref[...], (((1,), (0,)), ((), ())),
                                   preferred_element_type=jnp.float32)
        racc = racc.reshape(bsz, L, cout_p)
        res_ref[...] = racc.astype(res_ref.dtype)
        res_stats_ref[...] = _partial_stats(racc)


def _combine_kernel(y_ref, ys_ref, yb_ref, r_ref, rs_ref, rb_ref, o_ref):
    """Final stage: BN3+ReLU on the main path, BN on the residual, add, ReLU.

    Writes the full lane-padded channel width (lane-dense stores); the slice to
    out_chs is done by XLA in the wrapper."""
    h = jnp.maximum(y_ref[...].astype(jnp.float32) * ys_ref[...] + yb_ref[...], 0.0)
    r = r_ref[...].astype(jnp.float32) * rs_ref[...] + rb_ref[...]
    o_ref[...] = jnp.maximum(h + r, 0.0).astype(o_ref.dtype)


# --------------------------- pallas_call wrappers ---------------------------
def _run_stage(x, scale, shift, w, *, k, bn, apply_relu, emit_input_stats,
               matmul_dtype, store_dtype, vmem_limit, w_res=None):
    n, L, cin_p = x.shape
    cout_p = w.shape[1]
    n_tiles = n // bn
    fuse_residual = w_res is not None

    in_specs = [
        pl.BlockSpec((bn, L, cin_p), lambda i: (i, 0, 0)),
        pl.BlockSpec((1, 1, cin_p), lambda i: (0, 0, 0)),
        pl.BlockSpec((1, 1, cin_p), lambda i: (0, 0, 0)),
        # Constant across the grid. Single-buffering (pl.Buffered(1)) would save
        # VMEM on v7x but is skipped for lowering portability; the 2x cost is
        # charged in _pick_batch_block instead.
        pl.BlockSpec((k * cin_p, cout_p), lambda i: (0, 0)),
    ]
    inputs = [x, scale, shift, w]
    if fuse_residual:
        in_specs.append(pl.BlockSpec((cin_p, cout_p), lambda i: (0, 0)))
        inputs.append(w_res)

    out_shape = [jax.ShapeDtypeStruct((n, L, cout_p), store_dtype),
                 jax.ShapeDtypeStruct((n_tiles, 2, cout_p), jnp.float32)]
    out_specs = [pl.BlockSpec((bn, L, cout_p), lambda i: (i, 0, 0)),
                 pl.BlockSpec((1, 2, cout_p), lambda i: (i, 0, 0))]
    if fuse_residual:
        out_shape += [jax.ShapeDtypeStruct((n, L, cout_p), store_dtype),
                      jax.ShapeDtypeStruct((n_tiles, 2, cout_p), jnp.float32)]
        out_specs += [pl.BlockSpec((bn, L, cout_p), lambda i: (i, 0, 0)),
                      pl.BlockSpec((1, 2, cout_p), lambda i: (i, 0, 0))]
    if emit_input_stats:
        out_shape.append(jax.ShapeDtypeStruct((n_tiles, 2, cin_p), jnp.float32))
        out_specs.append(pl.BlockSpec((1, 2, cin_p), lambda i: (i, 0, 0)))

    flops = 2 * n * L * (k * cin_p) * cout_p
    if fuse_residual:
        flops += 2 * n * L * cin_p * cout_p
    bytes_accessed = int(x.size * x.dtype.itemsize + w.size * w.dtype.itemsize
                         + (2 if fuse_residual else 1) * n * L * cout_p
                         * jnp.dtype(store_dtype).itemsize)

    kernel = functools.partial(
        _stage_kernel, k=k, apply_relu=apply_relu,
        emit_input_stats=emit_input_stats, fuse_residual=fuse_residual,
        matmul_dtype=matmul_dtype)

    return pl.pallas_call(
        kernel,
        grid=(n_tiles,),
        in_specs=in_specs,
        out_specs=tuple(out_specs),
        out_shape=tuple(out_shape),
        compiler_params=pltpu.CompilerParams(
            dimension_semantics=("parallel",),
            vmem_limit_bytes=vmem_limit),
        cost_estimate=pl.CostEstimate(
            flops=flops, transcendentals=0, bytes_accessed=bytes_accessed),
    )(*inputs)


def _run_combine(y, ys, yb, r, rs, rb, *, bn, vmem_limit):
    n, L, cp = y.shape
    n_tiles = n // bn
    bytes_accessed = int(y.size * y.dtype.itemsize + r.size * r.dtype.itemsize
                         + n * L * cp * 4)
    return pl.pallas_call(
        _combine_kernel,
        grid=(n_tiles,),
        in_specs=[pl.BlockSpec((bn, L, cp), lambda i: (i, 0, 0)),
                  pl.BlockSpec((1, 1, cp), lambda i: (0, 0, 0)),
                  pl.BlockSpec((1, 1, cp), lambda i: (0, 0, 0)),
                  pl.BlockSpec((bn, L, cp), lambda i: (i, 0, 0)),
                  pl.BlockSpec((1, 1, cp), lambda i: (0, 0, 0)),
                  pl.BlockSpec((1, 1, cp), lambda i: (0, 0, 0))],
        out_specs=pl.BlockSpec((bn, L, cp), lambda i: (i, 0, 0)),
        out_shape=jax.ShapeDtypeStruct((n, L, cp), jnp.float32),
        compiler_params=pltpu.CompilerParams(
            dimension_semantics=("parallel",),
            vmem_limit_bytes=vmem_limit),
        cost_estimate=pl.CostEstimate(
            flops=6 * n * L * cp, transcendentals=0,
            bytes_accessed=bytes_accessed),
    )(y, ys, yb, r, rs, rb)


# --------------------------- host-side glue (O(C) work only) ---------------------------
def _bn_scale_shift(part_stats, gamma, beta, count, c_pad):
    """Finalize batch stats (sum, sumsq) and fold the BN affine into scale/shift."""
    tot = jnp.sum(part_stats, axis=0)                       # (2, c_pad)
    mean = tot[0] / count
    var = jnp.maximum(tot[1] / count - mean * mean, 0.0)    # biased var (PyTorch norm)
    rstd = jax.lax.rsqrt(var + BN_EPS)
    g = jnp.pad(gamma.astype(jnp.float32), (0, c_pad - gamma.shape[0]))
    b = jnp.pad(beta.astype(jnp.float32), (0, c_pad - beta.shape[0]))
    scale = g * rstd                                        # padded gamma==0 keeps pads at 0
    shift = b - mean * scale
    return scale.reshape(1, 1, c_pad), shift.reshape(1, 1, c_pad)


def _pack_w(w_oik, cin_p, cout_p, dtype):
    """PyTorch (Cout, Cin, K) -> (K*Cin_pad, Cout_pad) for one fused wide-K GEMM."""
    cout, cin, k = w_oik.shape
    w = jnp.transpose(w_oik, (2, 1, 0)).astype(jnp.float32)          # (K, Cin, Cout)
    w = jnp.pad(w, ((0, 0), (0, cin_p - cin), (0, cout_p - cout)))   # (K, Cin_p, Cout_p)
    return w.reshape(k * cin_p, cout_p).astype(dtype)


def _pick_batch_block(n, L, cin_p, cout_p, store_bytes, mm_bytes, fuse_residual,
                      vmem_limit):
    """Largest batch block that fits the VMEM budget of the worst stage (k=7)."""
    k = 7
    per_elem = L * (
        2 * cin_p * store_bytes                                 # input block x2 (pipeline)
        + (4 if fuse_residual else 2) * cout_p * store_bytes    # output block(s) x2
        + 4 * cin_p                                             # h (f32)
        + (k + 1) * cin_p * mm_bytes                            # stacked taps (+slack)
        + (8 if fuse_residual else 4) * cout_p)                 # f32 accumulators
    const = (2 * (k + (1 if fuse_residual else 0)) * cin_p * cout_p * mm_bytes
             + 16 * cin_p)                                      # weights x2 + scale/shift
    budget = int(vmem_limit * 0.8) - const
    bn_cap = max(budget // max(per_elem, 1), 1)
    divisors = [d for d in range(1, n + 1) if n % d == 0]
    fit = [d for d in divisors if d <= bn_cap] or [1]
    bn = max(fit)
    # Prefer >= 2 grid tiles (dual TensorCores on v7x + block pipelining), but
    # not at the cost of dropping below ~256 GEMM rows per tile when avoidable.
    if n // bn < 2:
        multi = [d for d in fit if n // d >= 2]
        if multi:
            best = max(multi)
            if best * L >= 256 or bn * L < 256:
                bn = best
    return bn


def resnet_basic_block_nlc(x_nlc, params, *, matmul_dtype=jnp.bfloat16,
                           batch_block=None):
    """x_nlc: (N, L, Cin). Returns (N, L, Cout) float32.

    Prefer this entry point when the surrounding graph already uses (N, L, C):
    it avoids NCL<->NLC transposes around the kernels."""
    n, L, in_chs = x_nlc.shape
    out_chs = params["w7"].shape[0]
    cin_p = _round_up(in_chs, LANE)
    cout_p = _round_up(out_chs, LANE)
    expansion = in_chs != out_chs
    store_dtype = matmul_dtype          # intermediates stored in this dtype
    sb = jnp.dtype(store_dtype).itemsize
    mb = jnp.dtype(matmul_dtype).itemsize
    vmem_limit = _vmem_limit_bytes()

    bn = (batch_block if batch_block is not None
          else _pick_batch_block(n, L, cin_p, cout_p, sb, mb, expansion, vmem_limit))
    if n % bn != 0:
        raise ValueError("batch_block must divide the batch size")
    count = n * L                       # BatchNorm1d statistics are over (N, L)

    # Channel-pad once (lane-dense) and store in the matmul dtype: halves the
    # stage-1 input DMA and the identity-residual re-read in the bf16 mode.
    xp = jnp.pad(x_nlc.astype(jnp.float32),
                 ((0, 0), (0, 0), (0, cin_p - in_chs))).astype(store_dtype)

    w7 = _pack_w(params["w7"], cin_p, cout_p, matmul_dtype)
    w5 = _pack_w(params["w5"], cout_p, cout_p, matmul_dtype)
    w3 = _pack_w(params["w3"], cout_p, cout_p, matmul_dtype)

    one_in = jnp.ones((1, 1, cin_p), jnp.float32)
    zero_in = jnp.zeros((1, 1, cin_p), jnp.float32)

    common = dict(bn=bn, matmul_dtype=matmul_dtype, store_dtype=store_dtype,
                  vmem_limit=vmem_limit)

    # --- stage 1: conv7 (+ fused 1x1 expansion conv, or identity-residual stats) ---
    if expansion:
        wexp = _pack_w(params["wexp"], cin_p, cout_p, matmul_dtype)   # (cin_p, cout_p)
        y7, st7, res, st_res = _run_stage(xp, one_in, zero_in, w7, k=7,
                                          apply_relu=False, emit_input_stats=False,
                                          w_res=wexp, **common)
    else:
        y7, st7, st_res = _run_stage(xp, one_in, zero_in, w7, k=7,
                                     apply_relu=False, emit_input_stats=True,
                                     **common)
        res = xp                        # identity residual: no 1x1 matmul at all
    s7, b7 = _bn_scale_shift(st7, params["g7"], params["b7"], count, cout_p)

    # --- stage 2: fused BN7+ReLU -> conv5 ---
    y5, st5 = _run_stage(y7, s7, b7, w5, k=5, apply_relu=True,
                         emit_input_stats=False, **common)
    s5, b5 = _bn_scale_shift(st5, params["g5"], params["b5"], count, cout_p)

    # --- stage 3: fused BN5+ReLU -> conv3 ---
    y3, st3 = _run_stage(y5, s5, b5, w3, k=3, apply_relu=True,
                         emit_input_stats=False, **common)
    s3, b3 = _bn_scale_shift(st3, params["g3"], params["b3"], count, cout_p)

    sr, br = _bn_scale_shift(st_res, params["gr"], params["br"], count, cout_p)

    # --- final: BN3+ReLU, BN(residual), add, ReLU; lane-dense padded store ---
    out_padded = _run_combine(y3, s3, b3, res, sr, br, bn=bn, vmem_limit=vmem_limit)
    return out_padded[..., :out_chs]    # drop lane padding with XLA (cheap slice)


def resnet_basic_block(x_ncl, params, *, matmul_dtype=jnp.bfloat16,
                       batch_block=None):
    """PyTorch-layout entry point: x (N, Cin, L) -> (N, Cout, L) float32."""
    out_nlc = resnet_basic_block_nlc(jnp.transpose(x_ncl, (0, 2, 1)), params,
                                     matmul_dtype=matmul_dtype,
                                     batch_block=batch_block)
    return jnp.transpose(out_nlc, (0, 2, 1))


# --------------------------- pure-JAX reference ---------------------------
def _ref_forward(x_ncl, params, in_chs, out_chs):
    def conv(x, w, pad):
        return jax.lax.conv_general_dilated(
            x, w.astype(jnp.float32), (1,), [(pad, pad)],
            dimension_numbers=("NCH", "OIH", "NCH"))

    def bn(y, g, b):
        m = jnp.mean(y, axis=(0, 2), keepdims=True)
        v = jnp.mean((y - m) ** 2, axis=(0, 2), keepdims=True)
        return (y - m) / jnp.sqrt(v + BN_EPS) * g[None, :, None] + b[None, :, None]

    x = x_ncl.astype(jnp.float32)
    h = jax.nn.relu(bn(conv(x, params["w7"], 3), params["g7"], params["b7"]))
    h = jax.nn.relu(bn(conv(h, params["w5"], 2), params["g5"], params["b5"]))
    h = jax.nn.relu(bn(conv(h, params["w3"], 1), params["g3"], params["b3"]))
    res = conv(x, params["wexp"], 0) if in_chs != out_chs else x
    res = bn(res, params["gr"], params["br"])
    return jax.nn.relu(h + res)


def _make_params(key, in_chs, out_chs):
    k7, k5, k3, ke = jax.random.split(key, 4)
    return {
        "w7": 0.1 * jax.random.normal(k7, (out_chs, in_chs, 7), jnp.float32),
        "w5": 0.1 * jax.random.normal(k5, (out_chs, out_chs, 5), jnp.float32),
        "w3": 0.1 * jax.random.normal(k3, (out_chs, out_chs, 3), jnp.float32),
        "wexp": 0.1 * jax.random.normal(ke, (out_chs, in_chs, 1), jnp.float32),
        "g7": jnp.ones((out_chs,), jnp.float32), "b7": jnp.zeros((out_chs,), jnp.float32),
        "g5": jnp.ones((out_chs,), jnp.float32), "b5": jnp.zeros((out_chs,), jnp.float32),
        "g3": jnp.ones((out_chs,), jnp.float32), "b3": jnp.zeros((out_chs,), jnp.float32),
        "gr": jnp.ones((out_chs,), jnp.float32), "br": jnp.zeros((out_chs,), jnp.float32),
    }


if __name__ == "__main__":
    key = jax.random.PRNGKey(0)
    kp, kx, kp2, kx2 = jax.random.split(key, 4)

    # Expansion case (in_chs != out_chs), PyTorch-style NCL input.
    N, IN_CHS, OUT_CHS, L = 4, 4, 8, 16
    params = _make_params(kp, IN_CHS, OUT_CHS)
    x = jax.random.normal(kx, (N, IN_CHS, L), jnp.float32)
    ref = jax.block_until_ready(_ref_forward(x, params, IN_CHS, OUT_CHS))

    # f32 matmul/storage mode: exact parity with PyTorch train-mode forward.
    fwd_f32 = jax.jit(functools.partial(resnet_basic_block, matmul_dtype=jnp.float32))
    out_f32 = jax.block_until_ready(fwd_f32(x, params))
    assert out_f32.shape == (N, OUT_CHS, L), out_f32.shape
    err = float(jnp.max(jnp.abs(out_f32 - ref)))
    assert jnp.allclose(out_f32, ref, rtol=5e-4, atol=5e-4), err

    # bf16 matmul/storage mode (default; recommended on v6e/v7x): loose check.
    fwd_bf16 = jax.jit(functools.partial(resnet_basic_block, matmul_dtype=jnp.bfloat16))
    out_bf16 = jax.block_until_ready(fwd_bf16(x, params))
    err_bf16 = float(jnp.max(jnp.abs(out_bf16 - ref)))
    assert jnp.allclose(out_bf16, ref, rtol=7e-2, atol=7e-2), err_bf16

    # Identity-residual case (in_chs == out_chs): the 1x1 residual conv is skipped.
    params_id = _make_params(kp2, OUT_CHS, OUT_CHS)
    x_id = jax.random.normal(kx2, (2, OUT_CHS, L), jnp.float32)
    ref_id = jax.block_until_ready(_ref_forward(x_id, params_id, OUT_CHS, OUT_CHS))
    fwd_id = jax.jit(functools.partial(resnet_basic_block, matmul_dtype=jnp.float32))
    out_id = jax.block_until_ready(fwd_id(x_id, params_id))
    err_id = float(jnp.max(jnp.abs(out_id - ref_id)))
    assert jnp.allclose(out_id, ref_id, rtol=5e-4, atol=5e-4), err_id

    print("KERNEL_OK")
</pallas_src>

<mosaic_0001>
module attributes {stable_mosaic.version = 11 : i64} {
  func.func @_stage_kernel(%arg0: i32, %arg1: memref<2x16x128xf32, #tpu.memory_space<vmem>>, %arg2: memref<1x1x128xf32, #tpu.memory_space<vmem>>, %arg3: memref<1x1x128xf32, #tpu.memory_space<vmem>>, %arg4: memref<640x128xf32, #tpu.memory_space<vmem>>, %arg5: memref<2x16x128xf32, #tpu.memory_space<vmem>>, %arg6: memref<1x2x128xf32, #tpu.memory_space<vmem>>) attributes {dimension_semantics = [#tpu.dimension_semantics<parallel>], iteration_bounds = array<i64: 2>, scalar_prefetch = 0 : i64, scratch_operands = 0 : i64, tpu.core_type = #tpu.core_type<tc>, window_params = [{transform_indices = @transform_0, window_bounds = array<i64: 2, 16, 128>}, {pipeline_mode = #tpu.pipeline_mode<synchronous>, transform_indices = @transform_1, window_bounds = array<i64: 1, 1, 128>}, {pipeline_mode = #tpu.pipeline_mode<synchronous>, transform_indices = @transform_2, window_bounds = array<i64: 1, 1, 128>}, {pipeline_mode = #tpu.pipeline_mode<synchronous>, transform_indices = @transform_3, window_bounds = array<i64: 640, 128>}, {transform_indices = @transform_4, window_bounds = array<i64: 2, 16, 128>}, {transform_indices = @transform_5, window_bounds = array<i64: 1, 2, 128>}]} {
    %c0 = arith.constant 0 : index
    %c0_0 = arith.constant 0 : index
    %c0_1 = arith.constant 0 : index
    %0 = vector.load %arg1[%c0, %c0_0, %c0_1] : memref<2x16x128xf32, #tpu.memory_space<vmem>>, vector<2x16x128xf32>
    %c0_2 = arith.constant 0 : index
    %c0_3 = arith.constant 0 : index
    %c0_4 = arith.constant 0 : index
    %1 = vector.load %arg2[%c0_2, %c0_3, %c0_4] : memref<1x1x128xf32, #tpu.memory_space<vmem>>, vector<1x1x128xf32>
    %2 = vector.broadcast %1 : vector<1x1x128xf32> to vector<2x16x128xf32>
    %3 = arith.mulf %0, %2 : vector<2x16x128xf32>
    %c0_5 = arith.constant 0 : index
    %c0_6 = arith.constant 0 : index
    %c0_7 = arith.constant 0 : index
    %4 = vector.load %arg3[%c0_5, %c0_6, %c0_7] : memref<1x1x128xf32, #tpu.memory_space<vmem>>, vector<1x1x128xf32>
    %5 = vector.broadcast %4 : vector<1x1x128xf32> to vector<2x16x128xf32>
    %6 = arith.addf %3, %5 : vector<2x16x128xf32>
    %cst = arith.constant 0.000000e+00 : f32
    %7 = vector.broadcast %cst : f32 to vector<2x16x128xf32>
    %8 = arith.maximumf %6, %7 : vector<2x16x128xf32>
    %9 = tpu.iota {dimensions = array<i32: 1>} : vector<1x16x1xi32>
    %c2_i32 = arith.constant 2 : i32
    %10 = tpu.dynamic_rotate %8 by %c2_i32 dim 1 : vector<2x16x128xf32>, i32 -> vector<2x16x128xf32>
    %c2_i32_8 = arith.constant 2 : i32
    %11 = vector.broadcast %c2_i32_8 : i32 to vector<1x16x1xi32>
    %12 = arith.cmpi sge, %9, %11 : vector<1x16x1xi32>
    %cst_9 = arith.constant 0.000000e+00 : f32
    %13 = vector.shape_cast %12 : vector<1x16x1xi1> to vector<1x16x1xi1>
    %14 = vector.broadcast %13 : vector<1x16x1xi1> to vector<2x16x128xi1>
    %15 = vector.broadcast %cst_9 : f32 to vector<2x16x128xf32>
    %16 = arith.select %14, %10, %15 : vector<2x16x128xi1>, vector<2x16x128xf32>
    %c1_i32 = arith.constant 1 : i32
    %17 = tpu.dynamic_rotate %8 by %c1_i32 dim 1 : vector<2x16x128xf32>, i32 -> vector<2x16x128xf32>
    %c1_i32_10 = arith.constant 1 : i32
    %18 = vector.broadcast %c1_i32_10 : i32 to vector<1x16x1xi32>
    %19 = arith.cmpi sge, %9, %18 : vector<1x16x1xi32>
    %cst_11 = arith.constant 0.000000e+00 : f32
    %20 = vector.shape_cast %19 : vector<1x16x1xi1> to vector<1x16x1xi1>
    %21 = vector.broadcast %20 : vector<1x16x1xi1> to vector<2x16x128xi1>
    %22 = vector.broadcast %cst_11 : f32 to vector<2x16x128xf32>
    %23 = arith.select %21, %17, %22 : vector<2x16x128xi1>, vector<2x16x128xf32>
    %c15_i32 = arith.constant 15 : i32
    %24 = tpu.dynamic_rotate %8 by %c15_i32 dim 1 : vector<2x16x128xf32>, i32 -> vector<2x16x128xf32>
    %c15_i32_12 = arith.constant 15 : i32
    %25 = vector.broadcast %c15_i32_12 : i32 to vector<1x16x1xi32>
    %26 = arith.cmpi slt, %9, %25 : vector<1x16x1xi32>
    %cst_13 = arith.constant 0.000000e+00 : f32
    %27 = vector.shape_cast %26 : vector<1x16x1xi1> to vector<1x16x1xi1>
    %28 = vector.broadcast %27 : vector<1x16x1xi1> to vector<2x16x128xi1>
    %29 = vector.broadcast %cst_13 : f32 to vector<2x16x128xf32>
    %30 = arith.select %28, %24, %29 : vector<2x16x128xi1>, vector<2x16x128xf32>
    %c14_i32 = arith.constant 14 : i32
    %31 = tpu.dynamic_rotate %8 by %c14_i32 dim 1 : vector<2x16x128xf32>, i32 -> vector<2x16x128xf32>
    %c14_i32_14 = arith.constant 14 : i32
    %32 = vector.broadcast %c14_i32_14 : i32 to vector<1x16x1xi32>
    %33 = arith.cmpi slt, %9, %32 : vector<1x16x1xi32>
    %cst_15 = arith.constant 0.000000e+00 : f32
    %34 = vector.shape_cast %33 : vector<1x16x1xi1> to vector<1x16x1xi1>
    %35 = vector.broadcast %34 : vector<1x16x1xi1> to vector<2x16x128xi1>
    %36 = vector.broadcast %cst_15 : f32 to vector<2x16x128xf32>
    %37 = arith.select %35, %31, %36 : vector<2x16x128xi1>, vector<2x16x128xf32>
    %38 = tpu.concatenate %16, %23, %8, %30, %37 in 2 : vector<2x16x128xf32>, vector<2x16x128xf32>, vector<2x16x128xf32>, vector<2x16x128xf32>, vector<2x16x128xf32> -> vector<2x16x640xf32>
    %39 = vector.shape_cast %38 : vector<2x16x640xf32> to vector<32x640xf32>
    %c0_16 = arith.constant 0 : index
    %c0_17 = arith.constant 0 : index
    %40 = vector.load %arg4[%c0_16, %c0_17] : memref<640x128xf32, #tpu.memory_space<vmem>>, vector<640x128xf32>
    %cst_18 = arith.constant dense<0.000000e+00> : vector<32x128xf32>
    %41 = tpu.matmul %39, %40, %cst_18 {dimension_numbers = #tpu.dot_dimension_numbers<[1], [0], [0], [1], [0, 0, 1, 1], [], []>} : vector<32x640xf32>, vector<640x128xf32>, vector<32x128xf32> -> vector<32x128xf32>
    %42 = vector.shape_cast %41 : vector<32x128xf32> to vector<2x16x128xf32>
    %c0_19 = arith.constant 0 : index
    %c0_20 = arith.constant 0 : index
    %c0_21 = arith.constant 0 : index
    %43 = vector.load %arg5[%c0_19, %c0_20, %c0_21] : memref<2x16x128xf32, #tpu.memory_space<vmem>>, vector<2x16x128xf32>
    tpu.vector_store %arg5[%c0_19, %c0_20, %c0_21], %42 {strides = array<i32>} : memref<2x16x128xf32, #tpu.memory_space<vmem>>, vector<2x16x128xf32>,
    %cst_22 = arith.constant dense<0.000000e+00> : vector<128xf32>
    %44 = vector.multi_reduction <add>, %42, %cst_22 [0, 1] : vector<2x16x128xf32> to vector<128xf32>
    %45 = vector.shape_cast %44 : vector<128xf32> to vector<1x1x128xf32>
    %46 = arith.mulf %42, %42 : vector<2x16x128xf32>
    %cst_23 = arith.constant dense<0.000000e+00> : vector<128xf32>
    %47 = vector.multi_reduction <add>, %46, %cst_23 [0, 1] : vector<2x16x128xf32> to vector<128xf32>
    %48 = vector.shape_cast %47 : vector<128xf32> to vector<1x1x128xf32>
    %49 = tpu.concatenate %45, %48 in 1 : vector<1x1x128xf32>, vector<1x1x128xf32> -> vector<1x2x128xf32>
    %c0_24 = arith.constant 0 : index
    %c0_25 = arith.constant 0 : index
    %c0_26 = arith.constant 0 : index
    %50 = vector.load %arg6[%c0_24, %c0_25, %c0_26] : memref<1x2x128xf32, #tpu.memory_space<vmem>>, vector<1x2x128xf32>
    tpu.vector_store %arg6[%c0_24, %c0_25, %c0_26], %49 {strides = array<i32>} : memref<1x2x128xf32, #tpu.memory_space<vmem>>, vector<1x2x128xf32>,
    return
  }
  func.func @transform_0(%arg0: i32) -> (i32, i32, i32) {
    %c0_i32 = arith.constant 0 : i32
    %c0_i32_0 = arith.constant 0 : i32
    %c0_i32_1 = arith.constant 0 : i32
    return %arg0, %c0_i32, %c0_i32_0 : i32, i32, i32
  }
  func.func @transform_1(%arg0: i32) -> (i32, i32, i32) {
    %c0_i32 = arith.constant 0 : i32
    %c0_i32_0 = arith.constant 0 : i32
    %c0_i32_1 = arith.constant 0 : i32
    %c0_i32_2 = arith.constant 0 : i32
    return %c0_i32, %c0_i32_0, %c0_i32_1 : i32, i32, i32
  }
  func.func @transform_2(%arg0: i32) -> (i32, i32, i32) {
    %c0_i32 = arith.constant 0 : i32
    %c0_i32_0 = arith.constant 0 : i32
    %c0_i32_1 = arith.constant 0 : i32
    %c0_i32_2 = arith.constant 0 : i32
    return %c0_i32, %c0_i32_0, %c0_i32_1 : i32, i32, i32
  }
  func.func @transform_3(%arg0: i32) -> (i32, i32) {
    %c0_i32 = arith.constant 0 : i32
    %c0_i32_0 = arith.constant 0 : i32
    %c0_i32_1 = arith.constant 0 : i32
    return %c0_i32, %c0_i32_0 : i32, i32
  }
  func.func @transform_4(%arg0: i32) -> (i32, i32, i32) {
    %c0_i32 = arith.constant 0 : i32
    %c0_i32_0 = arith.constant 0 : i32
    %c0_i32_1 = arith.constant 0 : i32
    return %arg0, %c0_i32, %c0_i32_0 : i32, i32, i32
  }
  func.func @transform_5(%arg0: i32) -> (i32, i32, i32) {
    %c0_i32 = arith.constant 0 : i32
    %c0_i32_0 = arith.constant 0 : i32
    %c0_i32_1 = arith.constant 0 : i32
    return %arg0, %c0_i32, %c0_i32_0 : i32, i32, i32
  }
}

module attributes {stable_mosaic.version = 11 : i64} {
  func.func @_stage_kernel(%arg0: i32, %arg1: memref<2x16x128xf32, #tpu.memory_space<vmem>>, %arg2: memref<1x1x128xf32, #tpu.memory_space<vmem>>, %arg3: memref<1x1x128xf32, #tpu.memory_space<vmem>>, %arg4: memref<896x128xf32, #tpu.memory_space<vmem>>, %arg5: memref<128x128xf32, #tpu.memory_space<vmem>>, %arg6: memref<2x16x128xf32, #tpu.memory_space<vmem>>, %arg7: memref<1x2x128xf32, #tpu.memory_space<vmem>>, %arg8: memref<2x16x128xf32, #tpu.memory_space<vmem>>, %arg9: memref<1x2x128xf32, #tpu.memory_space<vmem>>) attributes {dimension_semantics = [#tpu.dimension_semantics<parallel>], iteration_bounds = array<i64: 2>, scalar_prefetch = 0 : i64, scratch_operands = 0 : i64, tpu.core_type = #tpu.core_type<tc>, window_params = [{transform_indices = @transform_0, window_bounds = array<i64: 2, 16, 128>}, {pipeline_mode = #tpu.pipeline_mode<synchronous>, transform_indices = @transform_1, window_bounds = array<i64: 1, 1, 128>}, {pipeline_mode = #tpu.pipeline_mode<synchronous>, transform_indices = @transform_2, window_bounds = array<i64: 1, 1, 128>}, {pipeline_mode = #tpu.pipeline_mode<synchronous>, transform_indices = @transform_3, window_bounds = array<i64: 896, 128>}, {pipeline_mode = #tpu.pipeline_mode<synchronous>, transform_indices = @transform_4, window_bounds = array<i64: 128, 128>}, {transform_indices = @transform_5, window_bounds = array<i64: 2, 16, 128>}, {transform_indices = @transform_6, window_bounds = array<i64: 1, 2, 128>}, {transform_indices = @transform_7, window_bounds = array<i64: 2, 16, 128>}, {transform_indices = @transform_8, window_bounds = array<i64: 1, 2, 128>}]} {
    %c0 = arith.constant 0 : index
    %c0_0 = arith.constant 0 : index
    %c0_1 = arith.constant 0 : index
    %0 = vector.load %arg1[%c0, %c0_0, %c0_1] : memref<2x16x128xf32, #tpu.memory_space<vmem>>, vector<2x16x128xf32>
    %c0_2 = arith.constant 0 : index
    %c0_3 = arith.constant 0 : index
    %c0_4 = arith.constant 0 : index
    %1 = vector.load %arg2[%c0_2, %c0_3, %c0_4] : memref<1x1x128xf32, #tpu.memory_space<vmem>>, vector<1x1x128xf32>
    %2 = vector.broadcast %1 : vector<1x1x128xf32> to vector<2x16x128xf32>
    %3 = arith.mulf %0, %2 : vector<2x16x128xf32>
    %c0_5 = arith.constant 0 : index
    %c0_6 = arith.constant 0 : index
    %c0_7 = arith.constant 0 : index
    %4 = vector.load %arg3[%c0_5, %c0_6, %c0_7] : memref<1x1x128xf32, #tpu.memory_space<vmem>>, vector<1x1x128xf32>
    %5 = vector.broadcast %4 : vector<1x1x128xf32> to vector<2x16x128xf32>
    %6 = arith.addf %3, %5 : vector<2x16x128xf32>
    %7 = tpu.iota {dimensions = array<i32: 1>} : vector<1x16x1xi32>
    %c3_i32 = arith.constant 3 : i32
    %8 = tpu.dynamic_rotate %6 by %c3_i32 dim 1 : vector<2x16x128xf32>, i32 -> vector<2x16x128xf32>
    %c3_i32_8 = arith.constant 3 : i32
    %9 = vector.broadcast %c3_i32_8 : i32 to vector<1x16x1xi32>
    %10 = arith.cmpi sge, %7, %9 : vector<1x16x1xi32>
    %cst = arith.constant 0.000000e+00 : f32
    %11 = vector.shape_cast %10 : vector<1x16x1xi1> to vector<1x16x1xi1>
    %12 = vector.broadcast %11 : vector<1x16x1xi1> to vector<2x16x128xi1>
    %13 = vector.broadcast %cst : f32 to vector<2x16x128xf32>
    %14 = arith.select %12, %8, %13 : vector<2x16x128xi1>, vector<2x16x128xf32>
    %c2_i32 = arith.constant 2 : i32
    %15 = tpu.dynamic_rotate %6 by %c2_i32 dim 1 : vector<2x16x128xf32>, i32 -> vector<2x16x128xf32>
    %c2_i32_9 = arith.constant 2 : i32
    %16 = vector.broadcast %c2_i32_9 : i32 to vector<1x16x1xi32>
    %17 = arith.cmpi sge, %7, %16 : vector<1x16x1xi32>
    %cst_10 = arith.constant 0.000000e+00 : f32
    %18 = vector.shape_cast %17 : vector<1x16x1xi1> to vector<1x16x1xi1>
    %19 = vector.broadcast %18 : vector<1x16x1xi1> to vector<2x16x128xi1>
    %20 = vector.broadcast %cst_10 : f32 to vector<2x16x128xf32>
    %21 = arith.select %19, %15, %20 : vector<2x16x128xi1>, vector<2x16x128xf32>
    %c1_i32 = arith.constant 1 : i32
    %22 = tpu.dynamic_rotate %6 by %c1_i32 dim 1 : vector<2x16x128xf32>, i32 -> vector<2x16x128xf32>
    %c1_i32_11 = arith.constant 1 : i32
    %23 = vector.broadcast %c1_i32_11 : i32 to vector<1x16x1xi32>
    %24 = arith.cmpi sge, %7, %23 : vector<1x16x1xi32>
    %cst_12 = arith.constant 0.000000e+00 : f32
    %25 = vector.shape_cast %24 : vector<1x16x1xi1> to vector<1x16x1xi1>
    %26 = vector.broadcast %25 : vector<1x16x1xi1> to vector<2x16x128xi1>
    %27 = vector.broadcast %cst_12 : f32 to vector<2x16x128xf32>
    %28 = arith.select %26, %22, %27 : vector<2x16x128xi1>, vector<2x16x128xf32>
    %c15_i32 = arith.constant 15 : i32
    %29 = tpu.dynamic_rotate %6 by %c15_i32 dim 1 : vector<2x16x128xf32>, i32 -> vector<2x16x128xf32>
    %c15_i32_13 = arith.constant 15 : i32
    %30 = vector.broadcast %c15_i32_13 : i32 to vector<1x16x1xi32>
    %31 = arith.cmpi slt, %7, %30 : vector<1x16x1xi32>
    %cst_14 = arith.constant 0.000000e+00 : f32
    %32 = vector.shape_cast %31 : vector<1x16x1xi1> to vector<1x16x1xi1>
    %33 = vector.broadcast %32 : vector<1x16x1xi1> to vector<2x16x128xi1>
    %34 = vector.broadcast %cst_14 : f32 to vector<2x16x128xf32>
    %35 = arith.select %33, %29, %34 : vector<2x16x128xi1>, vector<2x16x128xf32>
    %c14_i32 = arith.constant 14 : i32
    %36 = tpu.dynamic_rotate %6 by %c14_i32 dim 1 : vector<2x16x128xf32>, i32 -> vector<2x16x128xf32>
    %c14_i32_15 = arith.constant 14 : i32
    %37 = vector.broadcast %c14_i32_15 : i32 to vector<1x16x1xi32>
    %38 = arith.cmpi slt, %7, %37 : vector<1x16x1xi32>
    %cst_16 = arith.constant 0.000000e+00 : f32
    %39 = vector.shape_cast %38 : vector<1x16x1xi1> to vector<1x16x1xi1>
    %40 = vector.broadcast %39 : vector<1x16x1xi1> to vector<2x16x128xi1>
    %41 = vector.broadcast %cst_16 : f32 to vector<2x16x128xf32>
    %42 = arith.select %40, %36, %41 : vector<2x16x128xi1>, vector<2x16x128xf32>
    %c13_i32 = arith.constant 13 : i32
    %43 = tpu.dynamic_rotate %6 by %c13_i32 dim 1 : vector<2x16x128xf32>, i32 -> vector<2x16x128xf32>
    %c13_i32_17 = arith.constant 13 : i32
    %44 = vector.broadcast %c13_i32_17 : i32 to vector<1x16x1xi32>
    %45 = arith.cmpi slt, %7, %44 : vector<1x16x1xi32>
    %cst_18 = arith.constant 0.000000e+00 : f32
    %46 = vector.shape_cast %45 : vector<1x16x1xi1> to vector<1x16x1xi1>
    %47 = vector.broadcast %46 : vector<1x16x1xi1> to vector<2x16x128xi1>
    %48 = vector.broadcast %cst_18 : f32 to vector<2x16x128xf32>
    %49 = arith.select %47, %43, %48 : vector<2x16x128xi1>, vector<2x16x128xf32>
    %50 = tpu.concatenate %14, %21, %28, %6, %35, %42, %49 in 2 : vector<2x16x128xf32>, vector<2x16x128xf32>, vector<2x16x128xf32>, vector<2x16x128xf32>, vector<2x16x128xf32>, vector<2x16x128xf32>, vector<2x16x128xf32> -> vector<2x16x896xf32>
    %51 = vector.shape_cast %50 : vector<2x16x896xf32> to vector<32x896xf32>
    %c0_19 = arith.constant 0 : index
    %c0_20 = arith.constant 0 : index
    %52 = vector.load %arg4[%c0_19, %c0_20] : memref<896x128xf32, #tpu.memory_space<vmem>>, vector<896x128xf32>
    %cst_21 = arith.constant dense<0.000000e+00> : vector<32x128xf32>
    %53 = tpu.matmul %51, %52, %cst_21 {dimension_numbers = #tpu.dot_dimension_numbers<[1], [0], [0], [1], [0, 0, 1, 1], [], []>} : vector<32x896xf32>, vector<896x128xf32>, vector<32x128xf32> -> vector<32x128xf32>
    %54 = vector.shape_cast %53 : vector<32x128xf32> to vector<2x16x128xf32>
    %c0_22 = arith.constant 0 : index
    %c0_23 = arith.constant 0 : index
    %c0_24 = arith.constant 0 : index
    %55 = vector.load %arg6[%c0_22, %c0_23, %c0_24] : memref<2x16x128xf32, #tpu.memory_space<vmem>>, vector<2x16x128xf32>
    tpu.vector_store %arg6[%c0_22, %c0_23, %c0_24], %54 {strides = array<i32>} : memref<2x16x128xf32, #tpu.memory_space<vmem>>, vector<2x16x128xf32>,
    %cst_25 = arith.constant dense<0.000000e+00> : vector<128xf32>
    %56 = vector.multi_reduction <add>, %54, %cst_25 [0, 1] : vector<2x16x128xf32> to vector<128xf32>
    %57 = vector.shape_cast %56 : vector<128xf32> to vector<1x1x128xf32>
    %58 = arith.mulf %54, %54 : vector<2x16x128xf32>
    %cst_26 = arith.constant dense<0.000000e+00> : vector<128xf32>
    %59 = vector.multi_reduction <add>, %58, %cst_26 [0, 1] : vector<2x16x128xf32> to vector<128xf32>
    %60 = vector.shape_cast %59 : vector<128xf32> to vector<1x1x128xf32>
    %61 = tpu.concatenate %57, %60 in 1 : vector<1x1x128xf32>, vector<1x1x128xf32> -> vector<1x2x128xf32>
    %c0_27 = arith.constant 0 : index
    %c0_28 = arith.constant 0 : index
    %c0_29 = arith.constant 0 : index
    %62 = vector.load %arg7[%c0_27, %c0_28, %c0_29] : memref<1x2x128xf32, #tpu.memory_space<vmem>>, vector<1x2x128xf32>
    tpu.vector_store %arg7[%c0_27, %c0_28, %c0_29], %61 {strides = array<i32>} : memref<1x2x128xf32, #tpu.memory_space<vmem>>, vector<1x2x128xf32>,
    %63 = vector.shape_cast %6 : vector<2x16x128xf32> to vector<32x128xf32>
    %c0_30 = arith.constant 0 : index
    %c0_31 = arith.constant 0 : index
    %64 = vector.load %arg5[%c0_30, %c0_31] : memref<128x128xf32, #tpu.memory_space<vmem>>, vector<128x128xf32>
    %cst_32 = arith.constant dense<0.000000e+00> : vector<32x128xf32>
    %65 = tpu.matmul %63, %64, %cst_32 {dimension_numbers = #tpu.dot_dimension_numbers<[1], [0], [0], [1], [0, 0, 1, 1], [], []>} : vector<32x128xf32>, vector<128x128xf32>, vector<32x128xf32> -> vector<32x128xf32>
    %66 = vector.shape_cast %65 : vector<32x128xf32> to vector<2x16x128xf32>
    %c0_33 = arith.constant 0 : index
    %c0_34 = arith.constant 0 : index
    %c0_35 = arith.constant 0 : index
    %67 = vector.load %arg8[%c0_33, %c0_34, %c0_35] : memref<2x16x128xf32, #tpu.memory_space<vmem>>, vector<2x16x128xf32>
    tpu.vector_store %arg8[%c0_33, %c0_34, %c0_35], %66 {strides = array<i32>} : memref<2x16x128xf32, #tpu.memory_space<vmem>>, vector<2x16x128xf32>,
    %cst_36 = arith.constant dense<0.000000e+00> : vector<128xf32>
    %68 = vector.multi_reduction <add>, %66, %cst_36 [0, 1] : vector<2x16x128xf32> to vector<128xf32>
    %69 = vector.shape_cast %68 : vector<128xf32> to vector<1x1x128xf32>
    %70 = arith.mulf %66, %66 : vector<2x16x128xf32>
    %cst_37 = arith.constant dense<0.000000e+00> : vector<128xf32>
    %71 = vector.multi_reduction <add>, %70, %cst_37 [0, 1] : vector<2x16x128xf32> to vector<128xf32>
    %72 = vector.shape_cast %71 : vector<128xf32> to vector<1x1x128xf32>
    %73 = tpu.concatenate %69, %72 in 1 : vector<1x1x128xf32>, vector<1x1x128xf32> -> vector<1x2x128xf32>
    %c0_38 = arith.constant 0 : index
    %c0_39 = arith.constant 0 : index
    %c0_40 = arith.constant 0 : index
    %74 = vector.load %arg9[%c0_38, %c0_39, %c0_40] : memref<1x2x128xf32, #tpu.memory_space<vmem>>, vector<1x2x128xf32>
    tpu.vector_store %arg9[%c0_38, %c0_39, %c0_40], %73 {strides = array<i32>} : memref<1x2x128xf32, #tpu.memory_space<vmem>>, vector<1x2x128xf32>,
    return
  }
  func.func @transform_0(%arg0: i32) -> (i32, i32, i32) {
    %c0_i32 = arith.constant 0 : i32
    %c0_i32_0 = arith.constant 0 : i32
    %c0_i32_1 = arith.constant 0 : i32
    return %arg0, %c0_i32, %c0_i32_0 : i32, i32, i32
  }
  func.func @transform_1(%arg0: i32) -> (i32, i32, i32) {
    %c0_i32 = arith.constant 0 : i32
    %c0_i32_0 = arith.constant 0 : i32
    %c0_i32_1 = arith.constant 0 : i32
    %c0_i32_2 = arith.constant 0 : i32
    return %c0_i32, %c0_i32_0, %c0_i32_1 : i32, i32, i32
  }
  func.func @transform_2(%arg0: i32) -> (i32, i32, i32) {
    %c0_i32 = arith.constant 0 : i32
    %c0_i32_0 = arith.constant 0 : i32
    %c0_i32_1 = arith.constant 0 : i32
    %c0_i32_2 = arith.constant 0 : i32
    return %c0_i32, %c0_i32_0, %c0_i32_1 : i32, i32, i32
  }
  func.func @transform_3(%arg0: i32) -> (i32, i32) {
    %c0_i32 = arith.constant 0 : i32
    %c0_i32_0 = arith.constant 0 : i32
    %c0_i32_1 = arith.constant 0 : i32
    return %c0_i32, %c0_i32_0 : i32, i32
  }
  func.func @transform_4(%arg0: i32) -> (i32, i32) {
    %c0_i32 = arith.constant 0 : i32
    %c0_i32_0 = arith.constant 0 : i32
    %c0_i32_1 = arith.constant 0 : i32
    return %c0_i32, %c0_i32_0 : i32, i32
  }
  func.func @transform_5(%arg0: i32) -> (i32, i32, i32) {
    %c0_i32 = arith.constant 0 : i32
    %c0_i32_0 = arith.constant 0 : i32
    %c0_i32_1 = arith.constant 0 : i32
    return %arg0, %c0_i32, %c0_i32_0 : i32, i32, i32
  }
  func.func @transform_6(%arg0: i32) -> (i32, i32, i32) {
    %c0_i32 = arith.constant 0 : i32
    %c0_i32_0 = arith.constant 0 : i32
    %c0_i32_1 = arith.constant 0 : i32
    return %arg0, %c0_i32, %c0_i32_0 : i32, i32, i32
  }
  func.func @transform_7(%arg0: i32) -> (i32, i32, i32) {
    %c0_i32 = arith.constant 0 : i32
    %c0_i32_0 = arith.constant 0 : i32
    %c0_i32_1 = arith.constant 0 : i32
    return %arg0, %c0_i32, %c0_i32_0 : i32, i32, i32
  }
  func.func @transform_8(%arg0: i32) -> (i32, i32, i32) {
    %c0_i32 = arith.constant 0 : i32
    %c0_i32_0 = arith.constant 0 : i32
    %c0_i32_1 = arith.constant 0 : i32
    return %arg0, %c0_i32, %c0_i32_0 : i32, i32, i32
  }
}

module attributes {stable_mosaic.version = 11 : i64} {
  func.func @_stage_kernel(%arg0: i32, %arg1: memref<2x16x128xf32, #tpu.memory_space<vmem>>, %arg2: memref<1x1x128xf32, #tpu.memory_space<vmem>>, %arg3: memref<1x1x128xf32, #tpu.memory_space<vmem>>, %arg4: memref<384x128xf32, #tpu.memory_space<vmem>>, %arg5: memref<2x16x128xf32, #tpu.memory_space<vmem>>, %arg6: memref<1x2x128xf32, #tpu.memory_space<vmem>>) attributes {dimension_semantics = [#tpu.dimension_semantics<parallel>], iteration_bounds = array<i64: 2>, scalar_prefetch = 0 : i64, scratch_operands = 0 : i64, tpu.core_type = #tpu.core_type<tc>, window_params = [{transform_indices = @transform_0, window_bounds = array<i64: 2, 16, 128>}, {pipeline_mode = #tpu.pipeline_mode<synchronous>, transform_indices = @transform_1, window_bounds = array<i64: 1, 1, 128>}, {pipeline_mode = #tpu.pipeline_mode<synchronous>, transform_indices = @transform_2, window_bounds = array<i64: 1, 1, 128>}, {pipeline_mode = #tpu.pipeline_mode<synchronous>, transform_indices = @transform_3, window_bounds = array<i64: 384, 128>}, {transform_indices = @transform_4, window_bounds = array<i64: 2, 16, 128>}, {transform_indices = @transform_5, window_bounds = array<i64: 1, 2, 128>}]} {
    %c0 = arith.constant 0 : index
    %c0_0 = arith.constant 0 : index
    %c0_1 = arith.constant 0 : index
    %0 = vector.load %arg1[%c0, %c0_0, %c0_1] : memref<2x16x128xf32, #tpu.memory_space<vmem>>, vector<2x16x128xf32>
    %c0_2 = arith.constant 0 : index
    %c0_3 = arith.constant 0 : index
    %c0_4 = arith.constant 0 : index
    %1 = vector.load %arg2[%c0_2, %c0_3, %c0_4] : memref<1x1x128xf32, #tpu.memory_space<vmem>>, vector<1x1x128xf32>
    %2 = vector.broadcast %1 : vector<1x1x128xf32> to vector<2x16x128xf32>
    %3 = arith.mulf %0, %2 : vector<2x16x128xf32>
    %c0_5 = arith.constant 0 : index
    %c0_6 = arith.constant 0 : index
    %c0_7 = arith.constant 0 : index
    %4 = vector.load %arg3[%c0_5, %c0_6, %c0_7] : memref<1x1x128xf32, #tpu.memory_space<vmem>>, vector<1x1x128xf32>
    %5 = vector.broadcast %4 : vector<1x1x128xf32> to vector<2x16x128xf32>
    %6 = arith.addf %3, %5 : vector<2x16x128xf32>
    %cst = arith.constant 0.000000e+00 : f32
    %7 = vector.broadcast %cst : f32 to vector<2x16x128xf32>
    %8 = arith.maximumf %6, %7 : vector<2x16x128xf32>
    %9 = tpu.iota {dimensions = array<i32: 1>} : vector<1x16x1xi32>
    %c1_i32 = arith.constant 1 : i32
    %10 = tpu.dynamic_rotate %8 by %c1_i32 dim 1 : vector<2x16x128xf32>, i32 -> vector<2x16x128xf32>
    %c1_i32_8 = arith.constant 1 : i32
    %11 = vector.broadcast %c1_i32_8 : i32 to vector<1x16x1xi32>
    %12 = arith.cmpi sge, %9, %11 : vector<1x16x1xi32>
    %cst_9 = arith.constant 0.000000e+00 : f32
    %13 = vector.shape_cast %12 : vector<1x16x1xi1> to vector<1x16x1xi1>
    %14 = vector.broadcast %13 : vector<1x16x1xi1> to vector<2x16x128xi1>
    %15 = vector.broadcast %cst_9 : f32 to vector<2x16x128xf32>
    %16 = arith.select %14, %10, %15 : vector<2x16x128xi1>, vector<2x16x128xf32>
    %c15_i32 = arith.constant 15 : i32
    %17 = tpu.dynamic_rotate %8 by %c15_i32 dim 1 : vector<2x16x128xf32>, i32 -> vector<2x16x128xf32>
    %c15_i32_10 = arith.constant 15 : i32
    %18 = vector.broadcast %c15_i32_10 : i32 to vector<1x16x1xi32>
    %19 = arith.cmpi slt, %9, %18 : vector<1x16x1xi32>
    %cst_11 = arith.constant 0.000000e+00 : f32
    %20 = vector.shape_cast %19 : vector<1x16x1xi1> to vector<1x16x1xi1>
    %21 = vector.broadcast %20 : vector<1x16x1xi1> to vector<2x16x128xi1>
    %22 = vector.broadcast %cst_11 : f32 to vector<2x16x128xf32>
    %23 = arith.select %21, %17, %22 : vector<2x16x128xi1>, vector<2x16x128xf32>
    %24 = tpu.concatenate %16, %8, %23 in 2 : vector<2x16x128xf32>, vector<2x16x128xf32>, vector<2x16x128xf32> -> vector<2x16x384xf32>
    %25 = vector.shape_cast %24 : vector<2x16x384xf32> to vector<32x384xf32>
    %c0_12 = arith.constant 0 : index
    %c0_13 = arith.constant 0 : index
    %26 = vector.load %arg4[%c0_12, %c0_13] : memref<384x128xf32, #tpu.memory_space<vmem>>, vector<384x128xf32>
    %cst_14 = arith.constant dense<0.000000e+00> : vector<32x128xf32>
    %27 = tpu.matmul %25, %26, %cst_14 {dimension_numbers = #tpu.dot_dimension_numbers<[1], [0], [0], [1], [0, 0, 1, 1], [], []>} : vector<32x384xf32>, vector<384x128xf32>, vector<32x128xf32> -> vector<32x128xf32>
    %28 = vector.shape_cast %27 : vector<32x128xf32> to vector<2x16x128xf32>
    %c0_15 = arith.constant 0 : index
    %c0_16 = arith.constant 0 : index
    %c0_17 = arith.constant 0 : index
    %29 = vector.load %arg5[%c0_15, %c0_16, %c0_17] : memref<2x16x128xf32, #tpu.memory_space<vmem>>, vector<2x16x128xf32>
    tpu.vector_store %arg5[%c0_15, %c0_16, %c0_17], %28 {strides = array<i32>} : memref<2x16x128xf32, #tpu.memory_space<vmem>>, vector<2x16x128xf32>,
    %cst_18 = arith.constant dense<0.000000e+00> : vector<128xf32>
    %30 = vector.multi_reduction <add>, %28, %cst_18 [0, 1] : vector<2x16x128xf32> to vector<128xf32>
    %31 = vector.shape_cast %30 : vector<128xf32> to vector<1x1x128xf32>
    %32 = arith.mulf %28, %28 : vector<2x16x128xf32>
    %cst_19 = arith.constant dense<0.000000e+00> : vector<128xf32>
    %33 = vector.multi_reduction <add>, %32, %cst_19 [0, 1] : vector<2x16x128xf32> to vector<128xf32>
    %34 = vector.shape_cast %33 : vector<128xf32> to vector<1x1x128xf32>
    %35 = tpu.concatenate %31, %34 in 1 : vector<1x1x128xf32>, vector<1x1x128xf32> -> vector<1x2x128xf32>
    %c0_20 = arith.constant 0 : index
    %c0_21 = arith.constant 0 : index
    %c0_22 = arith.constant 0 : index
    %36 = vector.load %arg6[%c0_20, %c0_21, %c0_22] : memref<1x2x128xf32, #tpu.memory_space<vmem>>, vector<1x2x128xf32>
    tpu.vector_store %arg6[%c0_20, %c0_21, %c0_22], %35 {strides = array<i32>} : memref<1x2x128xf32, #tpu.memory_space<vmem>>, vector<1x2x128xf32>,
    return
  }
  func.func @transform_0(%arg0: i32) -> (i32, i32, i32) {
    %c0_i32 = arith.constant 0 : i32
    %c0_i32_0 = arith.constant 0 : i32
    %c0_i32_1 = arith.constant 0 : i32
    return %arg0, %c0_i32, %c0_i32_0 : i32, i32, i32
  }
  func.func @transform_1(%arg0: i32) -> (i32, i32, i32) {
    %c0_i32 = arith.constant 0 : i32
    %c0_i32_0 = arith.constant 0 : i32
    %c0_i32_1 = arith.constant 0 : i32
    %c0_i32_2 = arith.constant 0 : i32
    return %c0_i32, %c0_i32_0, %c0_i32_1 : i32, i32, i32
  }
  func.func @transform_2(%arg0: i32) -> (i32, i32, i32) {
    %c0_i32 = arith.constant 0 : i32
    %c0_i32_0 = arith.constant 0 : i32
    %c0_i32_1 = arith.constant 0 : i32
    %c0_i32_2 = arith.constant 0 : i32
    return %c0_i32, %c0_i32_0, %c0_i32_1 : i32, i32, i32
  }
  func.func @transform_3(%arg0: i32) -> (i32, i32) {
    %c0_i32 = arith.constant 0 : i32
    %c0_i32_0 = arith.constant 0 : i32
    %c0_i32_1 = arith.constant 0 : i32
    return %c0_i32, %c0_i32_0 : i32, i32
  }
  func.func @transform_4(%arg0: i32) -> (i32, i32, i32) {
    %c0_i32 = arith.constant 0 : i32
    %c0_i32_0 = arith.constant 0 : i32
    %c0_i32_1 = arith.constant 0 : i32
    return %arg0, %c0_i32, %c0_i32_0 : i32, i32, i32
  }
  func.func @transform_5(%arg0: i32) -> (i32, i32, i32) {
    %c0_i32 = arith.constant 0 : i32
    %c0_i32_0 = arith.constant 0 : i32
    %c0_i32_1 = arith.constant 0 : i32
    return %arg0, %c0_i32, %c0_i32_0 : i32, i32, i32
  }
}

module attributes {stable_mosaic.version = 11 : i64} {
  func.func @_combine_kernel(%arg0: i32, %arg1: memref<2x16x128xf32, #tpu.memory_space<vmem>>, %arg2: memref<1x1x128xf32, #tpu.memory_space<vmem>>, %arg3: memref<1x1x128xf32, #tpu.memory_space<vmem>>, %arg4: memref<2x16x128xf32, #tpu.memory_space<vmem>>, %arg5: memref<1x1x128xf32, #tpu.memory_space<vmem>>, %arg6: memref<1x1x128xf32, #tpu.memory_space<vmem>>, %arg7: memref<2x16x128xf32, #tpu.memory_space<vmem>>) attributes {dimension_semantics = [#tpu.dimension_semantics<parallel>], iteration_bounds = array<i64: 2>, scalar_prefetch = 0 : i64, scratch_operands = 0 : i64, tpu.core_type = #tpu.core_type<tc>, window_params = [{transform_indices = @transform_0, window_bounds = array<i64: 2, 16, 128>}, {pipeline_mode = #tpu.pipeline_mode<synchronous>, transform_indices = @transform_1, window_bounds = array<i64: 1, 1, 128>}, {pipeline_mode = #tpu.pipeline_mode<synchronous>, transform_indices = @transform_2, window_bounds = array<i64: 1, 1, 128>}, {transform_indices = @transform_3, window_bounds = array<i64: 2, 16, 128>}, {pipeline_mode = #tpu.pipeline_mode<synchronous>, transform_indices = @transform_4, window_bounds = array<i64: 1, 1, 128>}, {pipeline_mode = #tpu.pipeline_mode<synchronous>, transform_indices = @transform_5, window_bounds = array<i64: 1, 1, 128>}, {transform_indices = @transform_6, window_bounds = array<i64: 2, 16, 128>}]} {
    %c0 = arith.constant 0 : index
    %c0_0 = arith.constant 0 : index
    %c0_1 = arith.constant 0 : index
    %0 = vector.load %arg1[%c0, %c0_0, %c0_1] : memref<2x16x128xf32, #tpu.memory_space<vmem>>, vector<2x16x128xf32>
    %c0_2 = arith.constant 0 : index
    %c0_3 = arith.constant 0 : index
    %c0_4 = arith.constant 0 : index
    %1 = vector.load %arg2[%c0_2, %c0_3, %c0_4] : memref<1x1x128xf32, #tpu.memory_space<vmem>>, vector<1x1x128xf32>
    %2 = vector.broadcast %1 : vector<1x1x128xf32> to vector<2x16x128xf32>
    %3 = arith.mulf %0, %2 : vector<2x16x128xf32>
    %c0_5 = arith.constant 0 : index
    %c0_6 = arith.constant 0 : index
    %c0_7 = arith.constant 0 : index
    %4 = vector.load %arg3[%c0_5, %c0_6, %c0_7] : memref<1x1x128xf32, #tpu.memory_space<vmem>>, vector<1x1x128xf32>
    %5 = vector.broadcast %4 : vector<1x1x128xf32> to vector<2x16x128xf32>
    %6 = arith.addf %3, %5 : vector<2x16x128xf32>
    %cst = arith.constant 0.000000e+00 : f32
    %7 = vector.broadcast %cst : f32 to vector<2x16x128xf32>
    %8 = arith.maximumf %6, %7 : vector<2x16x128xf32>
    %c0_8 = arith.constant 0 : index
    %c0_9 = arith.constant 0 : index
    %c0_10 = arith.constant 0 : index
    %9 = vector.load %arg4[%c0_8, %c0_9, %c0_10] : memref<2x16x128xf32, #tpu.memory_space<vmem>>, vector<2x16x128xf32>
    %c0_11 = arith.constant 0 : index
    %c0_12 = arith.constant 0 : index
    %c0_13 = arith.constant 0 : index
    %10 = vector.load %arg5[%c0_11, %c0_12, %c0_13] : memref<1x1x128xf32, #tpu.memory_space<vmem>>, vector<1x1x128xf32>
    %11 = vector.broadcast %10 : vector<1x1x128xf32> to vector<2x16x128xf32>
    %12 = arith.mulf %9, %11 : vector<2x16x128xf32>
    %c0_14 = arith.constant 0 : index
    %c0_15 = arith.constant 0 : index
    %c0_16 = arith.constant 0 : index
    %13 = vector.load %arg6[%c0_14, %c0_15, %c0_16] : memref<1x1x128xf32, #tpu.memory_space<vmem>>, vector<1x1x128xf32>
    %14 = vector.broadcast %13 : vector<1x1x128xf32> to vector<2x16x128xf32>
    %15 = arith.addf %12, %14 : vector<2x16x128xf32>
    %16 = arith.addf %8, %15 : vector<2x16x128xf32>
    %cst_17 = arith.constant 0.000000e+00 : f32
    %17 = vector.broadcast %cst_17 : f32 to vector<2x16x128xf32>
    %18 = arith.maximumf %16, %17 : vector<2x16x128xf32>
    %c0_18 = arith.constant 0 : index
    %c0_19 = arith.constant 0 : index
    %c0_20 = arith.constant 0 : index
    %19 = vector.load %arg7[%c0_18, %c0_19, %c0_20] : memref<2x16x128xf32, #tpu.memory_space<vmem>>, vector<2x16x128xf32>
    tpu.vector_store %arg7[%c0_18, %c0_19, %c0_20], %18 {strides = array<i32>} : memref<2x16x128xf32, #tpu.memory_space<vmem>>, vector<2x16x128xf32>,
    return
  }
  func.func @transform_0(%arg0: i32) -> (i32, i32, i32) {
    %c0_i32 = arith.constant 0 : i32
    %c0_i32_0 = arith.constant 0 : i32
    %c0_i32_1 = arith.constant 0 : i32
    return %arg0, %c0_i32, %c0_i32_0 : i32, i32, i32
  }
  func.func @transform_1(%arg0: i32) -> (i32, i32, i32) {
    %c0_i32 = arith.constant 0 : i32
    %c0_i32_0 = arith.constant 0 : i32
    %c0_i32_1 = arith.constant 0 : i32
    %c0_i32_2 = arith.constant 0 : i32
    return %c0_i32, %c0_i32_0, %c0_i32_1 : i32, i32, i32
  }
  func.func @transform_2(%arg0: i32) -> (i32, i32, i32) {
    %c0_i32 = arith.constant 0 : i32
    %c0_i32_0 = arith.constant 0 : i32
    %c0_i32_1 = arith.constant 0 : i32
    %c0_i32_2 = arith.constant 0 : i32
    return %c0_i32, %c0_i32_0, %c0_i32_1 : i32, i32, i32
  }
  func.func @transform_3(%arg0: i32) -> (i32, i32, i32) {
    %c0_i32 = arith.constant 0 : i32
    %c0_i32_0 = arith.constant 0 : i32
    %c0_i32_1 = arith.constant 0 : i32
    return %arg0, %c0_i32, %c0_i32_0 : i32, i32, i32
  }
  func.func @transform_4(%arg0: i32) -> (i32, i32, i32) {
    %c0_i32 = arith.constant 0 : i32
    %c0_i32_0 = arith.constant 0 : i32
    %c0_i32_1 = arith.constant 0 : i32
    %c0_i32_2 = arith.constant 0 : i32
    return %c0_i32, %c0_i32_0, %c0_i32_1 : i32, i32, i32
  }
  func.func @transform_5(%arg0: i32) -> (i32, i32, i32) {
    %c0_i32 = arith.constant 0 : i32
    %c0_i32_0 = arith.constant 0 : i32
    %c0_i32_1 = arith.constant 0 : i32
    %c0_i32_2 = arith.constant 0 : i32
    return %c0_i32, %c0_i32_0, %c0_i32_1 : i32, i32, i32
  }
  func.func @transform_6(%arg0: i32) -> (i32, i32, i32) {
    %c0_i32 = arith.constant 0 : i32
    %c0_i32_0 = arith.constant 0 : i32
    %c0_i32_1 = arith.constant 0 : i32
    return %arg0, %c0_i32, %c0_i32_0 : i32, i32, i32
  }
}

</mosaic_0001>

<bundles_post_ra>
// kernel: resnet_basic_block.7
= control target key start
LH: loop header
LB: loop body
LE: loop exit
PB: predicated region body
PF: predicated region fallthrough
CT: control target
= control target key end

     0   :  { %s497_s21 = smov 0   ;;  %s534_s0 = inlined_call_operand.vmem [shape: f32[4,16,128], index: 0, kind: input, shape index: {}]   ;;  %s535_s1 = inlined_call_operand.vmem [shape: f32[1,1,128], index: 1, kind: input, shape index: {}]   ;;  %s536_s2 = inlined_call_operand.vmem [shape: f32[1,1,128], index: 2, kind: input, shape index: {}]   ;;  %s537_s3 = inlined_call_operand.vmem [shape: f32[4,16,128], index: 3, kind: input, shape index: {}]   ;;  %s538_s4 = inlined_call_operand.vmem [shape: f32[1,1,128], index: 4, kind: input, shape index: {}]   ;;  %s539_s5 = inlined_call_operand.vmem [shape: f32[1,1,128], index: 5, kind: input, shape index: {}]   ;;  %s540_s6 = inlined_call_operand.vmem [shape: f32[4,16,128], index: 6, kind: output, shape index: {}]  }
   0x1 LB: > { %s423_s22 = sadd.s32 4294967295, %s460_s21   ;;  %p427_p0 = scmp.ge.s32.totalorder %s460_s21, 1  ;;  %s460_s21 = sphi %s497_s21, %s16_s21  }
   0x2   : > { %p226_p1 = scmp.lt.s32.totalorder %s460_s21, 3 }
   0x4   : > { %p227_p2 = pnand %p427_p0, %p226_p1 }
   0x5   : > { %s428_s23 = sshll.u32 (!%p227_p2), %s423_s22, 1  ;;  %v437_v0 = vld [vmem:[%s535_s1] ss:$0 sm:$0xff] (!%p227_p2) }
   0x6   : > { %230 = sbr.rel (%p227_p2) target bundleno = 30 (0x1e), region = 44  ;;  %p265_p3 = scmp.lt.s32.totalorder (!%p227_p2), %s428_s23, 3  ;;  %v439_v1 = vld [vmem:[%s538_s4] ss:$0 sm:$0xff] (!%p227_p2) }
   0x7   : > { %v438_v2 = vld [vmem:[%s536_s2] ss:$0 sm:$0xff] (!%p227_p2) }
   0x8   : > { %v440_v3 = vld [vmem:[%s539_s5] ss:$0 sm:$0xff] (!%p227_p2) }
   0xd   : > { %s542_s23 = smov (!%p265_p3, %s428_s23), 3 }
   0xe   : > { %s505_s24 = sshll.u32 %s542_s23, 4 }
   0xf   : > { %s269_s7 = scalar_lea.vmem %s534_s0, %s505_s24  ;;  %s276_s10 = scalar_lea.vmem %s537_s3, %s505_s24 }
  0x10   : > { %v285_v4 = vld [vmem:[%s269_s7] sm:$0xff]  ;;  %v286_v6 = vld [vmem:[%s269_s7 + $0x8] sm:$0xff]  ;;  %v287_v11 = vld [vmem:[%s269_s7 + $0x10] sm:$0xff]  ;;  %s283_s17 = scalar_lea.vmem %s540_s6, %s505_s24 }
  0x11   : > { %v315_v5 = vld [vmem:[%s276_s10] sm:$0xff]  ;;  %v296_v7 = vmul.f32 %v437_v0, %v285_v4  ;;  %v297_v9 = vmul.f32 %v437_v0, %v286_v6  ;;  %v316_v10 = vld [vmem:[%s276_s10 + $0x8] sm:$0xff]  ;;  %v317_v12 = vld [vmem:[%s276_s10 + $0x10] sm:$0xff]  ;;  %v298_v14 = vmul.f32 %v437_v0, %v287_v11 }
  0x12   : > { %v326_v8 = vmul.f32 %v439_v1, %v315_v5  ;;  %v327_v13 = vmul.f32 %v439_v1, %v316_v10  ;;  %v328_v15 = vmul.f32 %v439_v1, %v317_v12  ;;  %v288_v16 = vld [vmem:[%s269_s7 + $0x18] sm:$0xff] }
  0x13   : > { %v318_v17 = vld [vmem:[%s276_s10 + $0x18] sm:$0xff]  ;;  %v307_v18 = vadd.f32 %v438_v2, %v296_v7  ;;  %v308_v20 = vadd.f32 %v438_v2, %v297_v9  ;;  %v299_v21 = vmul.f32 %v437_v0, %v288_v16  ;;  %v309_v23 = vadd.f32 %v438_v2, %v298_v14 }
  0x14   : > { %v337_v19 = vadd.f32 %v440_v3, %v326_v8  ;;  %v338_v22 = vadd.f32 %v440_v3, %v327_v13  ;;  %v339_v24 = vadd.f32 %v440_v3, %v328_v15  ;;  %v329_v25 = vmul.f32 %v439_v1, %v318_v17 }
  0x15   : > { %v311_v26 = vmax.f32 %v307_v18, 0.0  ;;  %v312_v27 = vmax.f32 %v308_v20, 0.0  ;;  %v310_v28 = vadd.f32 %v438_v2, %v299_v21  ;;  %v313_v29 = vmax.f32 %v309_v23, 0.0 }
  0x16   : > { %v340_v30 = vadd.f32 %v440_v3, %v329_v25 }
  0x17   : > { %v341_v31 = vadd.f32 %v337_v19, %v311_v26  ;;  %v342_v32 = vadd.f32 %v338_v22, %v312_v27  ;;  %v314_v33 = vmax.f32 %v310_v28, 0.0  ;;  %v343_v34 = vadd.f32 %v339_v24, %v313_v29 }
  0x19   : > { %v345_v35 = vmax.f32 %v341_v31, 0.0  ;;  %v346_v36 = vmax.f32 %v342_v32, 0.0  ;;  %v344_v37 = vadd.f32 %v340_v30, %v314_v33  ;;  %v347_v38 = vmax.f32 %v343_v34, 0.0 }
  0x1b   : > { %349 = vst [vmem:[%s283_s17] sm:$0xff] %v345_v35  ;;  %350 = vst [vmem:[%s283_s17 + $0x8] sm:$0xff] %v346_v36  ;;  %v348_v39 = vmax.f32 %v344_v37, 0.0 }
  0x1c   : > { %351 = vst [vmem:[%s283_s17 + $0x10] sm:$0xff] %v347_v38 }
  0x1d   : > { %352 = vst [vmem:[%s283_s17 + $0x18] sm:$0xff] %v348_v39 }
  0x1e PF: > { %s16_s21 = sadd.s32 1, %s460_s21  }
  0x1f   : > { %p13_p4 = scmp.ge.s32.totalorder %s16_s21, 4  }
  0x21   :  { %15 = sbr.rel (!%p13_p4) target bundleno = 1 (0x1), region = 77 }

// kernel: resnet_basic_block.6
= control target key start
LH: loop header
LB: loop body
LE: loop exit
PB: predicated region body
PF: predicated region fallthrough
CT: control target
= control target key end

     0   :  { %s885_s18 = smov 0   ;;  %s1103_s0 = inlined_call_operand.vmem [shape: f32[4,16,128], index: 0, kind: input, shape index: {}]   ;;  %s1104_s1 = inlined_call_operand.vmem [shape: f32[1,1,128], index: 1, kind: input, shape index: {}]   ;;  %s1105_s2 = inlined_call_operand.vmem [shape: f32[1,1,128], index: 2, kind: input, shape index: {}]   ;;  %s1106_s3 = inlined_call_operand.vmem [shape: f32[384,128], index: 3, kind: input, shape index: {}]   ;;  %s1107_s4 = inlined_call_operand.vmem [shape: f32[4,16,128], index: 4, kind: output, shape index: {0}]   ;;  %s1108_s5 = inlined_call_operand.vmem [shape: f32[2,2,128], index: 5, kind: output, shape index: {1}]  }
   0x1 LB: > { %s891_s19 = sadd.s32 4294967295, %s853_s18   ;;  %p655_p0 = scmp.ge.s32.totalorder %s853_s18, 1  ;;  %s853_s18 = sphi %s885_s18, %s16_s18  }
   0x2   : > { %p192_p1 = scmp.lt.s32.totalorder %s853_s18, 3 }
   0x4   : > { %p193_p2 = pnand %p655_p0, %p192_p1 }
   0x5   : > { %v331_v0 = vld [vmem:[%s1106_s3 + $0x80] sm:$0xff] (!%p193_p2)  ;;  %v332_v1 = vld [vmem:[%s1106_s3 + $0x88] sm:$0xff] (!%p193_p2)  ;;  %s656_s26 = sshll.u32 (!%p193_p2), %s891_s19, 1  ;;  %v333_v9 = vld [vmem:[%s1106_s3 + $0x90] sm:$0xff] (!%p193_p2)  ;;  %v274_v50 = vlaneseq (!%p193_p2)  ;;  %p240_p4 = scmp.lt.s32.totalorder (!%p193_p2), %s891_s19, 1  ;;  %vm559_vm4 = vcmask (!%p193_p2), 1040384  }
   0x6   : > { %196 = sbr.rel (%p193_p2) target bundleno = 287 (0x11f), region = 36  ;;  %v315_v2 = vld [vmem:[%s1106_s3] sm:$0xff] (!%p193_p2)  ;;  %v775_v3 = vpack.c.bf16 (!%p193_p2), %v332_v1, %v331_v0  ;;  %v316_v4 = vld [vmem:[%s1106_s3 + $0x8] sm:$0xff] (!%p193_p2)  ;;  %v334_v10 = vld [vmem:[%s1106_s3 + $0x98] sm:$0xff] (!%p193_p2)  ;;  %p925_p3 = scmp.lt.s32.totalorder (!%p193_p2), %s656_s26, 3 }
   0x7   : > { %v347_v5 = vld [vmem:[%s1106_s3 + $0x100] sm:$0xff] (!%p193_p2)  ;;  %v348_v6 = vld [vmem:[%s1106_s3 + $0x108] sm:$0xff] (!%p193_p2)  ;;  %v777_v7 = vpack.c.bf16 (!%p193_p2), %v316_v4, %v315_v2  ;;  %v317_v11 = vld [vmem:[%s1106_s3 + $0x10] sm:$0xff] (!%p193_p2)  ;;  %v779_v12 = vpack.c.bf16 (!%p193_p2), %v334_v10, %v333_v9  ;;  %v1040_v4 = vshrl.u32 (!%p193_p2), %v274_v50, 7 }
   0x8   : > { %v807_v8 = vpack.c.bf16 (!%p193_p2), %v348_v6, %v347_v5  ;;  %776 = vmatprep.subr.bf16.mxu0 (!%p193_p2), %v775_v3  ;;  %v318_v13 = vld [vmem:[%s1106_s3 + $0x18] sm:$0xff] (!%p193_p2)  ;;  %v349_v14 = vld [vmem:[%s1106_s3 + $0x110] sm:$0xff] (!%p193_p2)  ;;  %v335_v18 = vld [vmem:[%s1106_s3 + $0xa0] sm:$0xff] (!%p193_p2) }
   0x9   : > { %v350_v15 = vld [vmem:[%s1106_s3 + $0x118] sm:$0xff] (!%p193_p2)  ;;  %778 = vmatpush3.bf16.msra.mxu0 (!%p193_p2), %v777_v7  ;;  %v781_v16 = vpack.c.bf16 (!%p193_p2), %v318_v13, %v317_v11  ;;  %v336_v19 = vld [vmem:[%s1106_s3 + $0xa8] sm:$0xff] (!%p193_p2)  ;;  %v319_v20 = vld [vmem:[%s1106_s3 + $0x20] sm:$0xff] (!%p193_p2)  ;;  %vm300_vm0 = vcmp.lt.s32.totalorder (!%p193_p2), %v1040_v4, 7  ;;  %vm281_vm1 = vcmp.lt.s32.totalorder (!%p193_p2), %v1040_v4, 1  ;;  %vm286_vm2 = vcmp.ge.s32.totalorder (!%p193_p2), %v1040_v4, 1 }
   0xa   : > { %808 = vmatprep.subr.bf16.mxu1 (!%p193_p2), %v807_v8  ;;  %v811_v17 = vpack.c.bf16 (!%p193_p2), %v350_v15, %v349_v14  ;;  %780 = vmatprep.subr.bf16.mxu0 (!%p193_p2), %v779_v12  ;;  %v783_v21 = vpack.c.bf16 (!%p193_p2), %v336_v19, %v335_v18  ;;  %v320_v22 = vld [vmem:[%s1106_s3 + $0x28] sm:$0xff] (!%p193_p2)  ;;  %v351_v23 = vld [vmem:[%s1106_s3 + $0x120] sm:$0xff] (!%p193_p2)  ;;  %v337_v26 = vld [vmem:[%s1106_s3 + $0xb0] sm:$0xff] (!%p193_p2) }
   0xb   : > { %810 = vmatpush3.bf16.msra.mxu1 (!%p193_p2), %v807_v8  ;;  %v352_v24 = vld [vmem:[%s1106_s3 + $0x128] sm:$0xff] (!%p193_p2)  ;;  %v338_v27 = vld [vmem:[%s1106_s3 + $0xb8] sm:$0xff] (!%p193_p2)  ;;  %v353_v28 = vld [vmem:[%s1106_s3 + $0x130] sm:$0xff] (!%p193_p2)  ;;  %v785_v30 = vpack.c.bf16 (!%p193_p2), %v320_v22, %v319_v20 }
   0xc   : > { %812 = vmatprep.subr.bf16.mxu1 (!%p193_p2), %v811_v17  ;;  %v815_v25 = vpack.c.bf16 (!%p193_p2), %v352_v24, %v351_v23  ;;  %v354_v29 = vld [vmem:[%s1106_s3 + $0x138] sm:$0xff] (!%p193_p2)  ;;  %v787_v31 = vpack.c.bf16 (!%p193_p2), %v338_v27, %v337_v26  ;;  %v321_v32 = vld [vmem:[%s1106_s3 + $0x30] sm:$0xff] (!%p193_p2)  ;;  %v339_v35 = vld [vmem:[%s1106_s3 + $0xc0] sm:$0xff] (!%p193_p2) }
   0xd   : > { %s1111_s26 = smov (!%p925_p3, %s656_s26), 3  ;;  %782 = vmatpush3.bf16.msra.mxu0 %v781_v16  ;;  %v322_v33 = vld [vmem:[%s1106_s3 + $0x38] sm:$0xff]  ;;  %v819_v34 = vpack.c.bf16 %v354_v29, %v353_v28  ;;  %v340_v36 = vld [vmem:[%s1106_s3 + $0xc8] sm:$0xff]  ;;  %v355_v37 = vld [vmem:[%s1106_s3 + $0x140] sm:$0xff]  ;;  %s1113_s19 = smov (!%p240_p4, %s891_s19), 1 }
   0xe   : > { %784 = vmatprep.subr.bf16.mxu0 %v783_v21  ;;  %s671_s30 = sshll.u32 %s1111_s26, 4  ;;  %v356_v38 = vld [vmem:[%s1106_s3 + $0x148] sm:$0xff]  ;;  %v789_v39 = vpack.c.bf16 %v322_v33, %v321_v32  ;;  %v791_v40 = vpack.c.bf16 %v340_v36, %v339_v35  ;;  %v323_v41 = vld [vmem:[%s1106_s3 + $0x40] sm:$0xff]  ;;  %v341_v43 = vld [vmem:[%s1106_s3 + $0xd0] sm:$0xff]  ;;  %v276_v33 = vadd.s32 8, %v1040_v4  ;;  %s662_s26 = sshll.u32 %s1113_s19, 1 }
   0xf   : > { %814 = vmatpush3.bf16.msra.mxu1 %v811_v17  ;;  %v324_v42 = vld [vmem:[%s1106_s3 + $0x48] sm:$0xff]  ;;  %s231_s21 = scalar_lea.vmem %s1103_s0, %s671_s30  ;;  %v823_v44 = vpack.c.bf16 %v356_v38, %v355_v37  ;;  %v342_v45 = vld [vmem:[%s1106_s3 + $0xd8] sm:$0xff]  ;;  %v357_v46 = vld [vmem:[%s1106_s3 + $0x150] sm:$0xff]  ;;  %s238_s20 = scalar_lea.vmem %s1107_s4, %s671_s30 }
  0x10   : > { %816 = vmatprep.subr.bf16.mxu1 %v815_v25  ;;  %v358_v47 = vld [vmem:[%s1106_s3 + $0x158] sm:$0xff]  ;;  %v325_v48 = vld [vmem:[%s1106_s3 + $0x50] sm:$0xff]  ;;  %v793_v51 = vpack.c.bf16 %v324_v42, %v323_v41  ;;  %v343_v52 = vld [vmem:[%s1106_s3 + $0xe0] sm:$0xff]  ;;  %v795_v56 = vpack.c.bf16 %v342_v45, %v341_v43  ;;  %vm306_vm3 = vcmp.lt.s32.totalorder %v276_v33, 15  ;;  %s243_s23 = scalar_lea.vmem %s1108_s5, %s662_s26 }
  0x11   : > { %786 = vmatpush3.bf16.msra.mxu0 %v785_v30  ;;  %v326_v49 = vld [vmem:[%s1106_s3 + $0x58] sm:$0xff]  ;;  %v244_v53 = vld [vmem:[%s231_s21] sm:$0xff]  ;;  %v245_v54 = vld [vmem:[%s231_s21 + $0x8] sm:$0xff]  ;;  %v827_v57 = vpack.c.bf16 %v358_v47, %v357_v46 }
  0x12   : > { %788 = vmatprep.subr.bf16.mxu0 %v787_v31  ;;  %v247_v55 = vld [vmem:[%s231_s21 + $0x18] sm:$0xff]  ;;  %v663_v58 = vld [vmem:[%s1104_s1] ss:$0 sm:$0xff]  ;;  %v246_v60 = vld [vmem:[%s231_s21 + $0x10] sm:$0xff]  ;;  %v797_v5 = vpack.c.bf16 %v326_v49, %v325_v48 }
  0x13   : > { %818 = vmatpush3.bf16.msra.mxu1 %v815_v25  ;;  %v664_v59 = vld [vmem:[%s1105_s2] ss:$0 sm:$0xff]  ;;  %v344_v61 = vld [vmem:[%s1106_s3 + $0xe8] sm:$0xff]  ;;  %v255_v0 = vmul.f32 %v663_v58, %v244_v53  ;;  %v256_v1 = vmul.f32 %v663_v58, %v245_v54  ;;  %v258_v2 = vmul.f32 %v663_v58, %v247_v55  ;;  %v257_v3 = vmul.f32 %v663_v58, %v246_v60  ;;  %v345_v12 = vld [vmem:[%s1106_s3 + $0xf0] sm:$0xff] }
  0x14   : > { %820 = vmatprep.subr.bf16.mxu1 %v819_v34  ;;  %v359_v62 = vld [vmem:[%s1106_s3 + $0x160] sm:$0xff]  ;;  %v360_v63 = vld [vmem:[%s1106_s3 + $0x168] sm:$0xff]  ;;  %v799_v8 = vpack.c.bf16 %v344_v61, %v343_v52  ;;  %v346_v13 = vld [vmem:[%s1106_s3 + $0xf8] sm:$0xff] }
  0x15   : > { %790 = vmatpush3.bf16.msra.mxu0 %v789_v39  ;;  %v266_v6 = vadd.f32 %v664_v59, %v255_v0  ;;  %v267_v7 = vadd.f32 %v664_v59, %v256_v1  ;;  %v327_v9 = vld [vmem:[%s1106_s3 + $0x60] sm:$0xff]  ;;  %v328_v10 = vld [vmem:[%s1106_s3 + $0x68] sm:$0xff]  ;;  %v831_v11 = vpack.c.bf16 %v360_v63, %v359_v62  ;;  %v269_v14 = vadd.f32 %v664_v59, %v258_v2  ;;  %v361_v18 = vld [vmem:[%s1106_s3 + $0x170] sm:$0xff] }
  0x16   : > { %792 = vmatprep.subr.bf16.mxu0 %v791_v40  ;;  %v268_v17 = vadd.f32 %v664_v59, %v257_v3  ;;  %v362_v19 = vld [vmem:[%s1106_s3 + $0x178] sm:$0xff]  ;;  %v801_v20 = vpack.c.bf16 %v328_v10, %v327_v9  ;;  %v803_v23 = vpack.c.bf16 %v346_v13, %v345_v12  ;;  %v329_v24 = vld [vmem:[%s1106_s3 + $0x70] sm:$0xff] }
  0x17   : > { %822 = vmatpush3.bf16.msra.mxu1 %v819_v34  ;;  %v270_v15 = vmax.f32 %v266_v6, 0.0  ;;  %v271_v16 = vmax.f32 %v267_v7, 0.0  ;;  %v330_v25 = vld [vmem:[%s1106_s3 + $0x78] sm:$0xff]  ;;  %v835_v26 = vpack.c.bf16 %v362_v19, %v361_v18  ;;  %v273_v29 = vmax.f32 %v269_v14, 0.0 }
  0x18   : > { %824 = vmatprep.subr.bf16.mxu1 %v823_v44  ;;  %v272_v28 = vmax.f32 %v268_v17, 0.0  ;;  %v805_v30 = vpack.c.bf16 %v330_v25, %v329_v24 }
  0x19   : > { %794 = vmatpush3.bf16.msra.mxu0 %v793_v51  ;;  %427 = vmatprep.mubr.f32.mxu0 %v270_v15  ;;  %v296_v21 = vrot.slane %v270_v15, 1  ;;  %v298_v22 = vrot.slane %v271_v16, 1  ;;  %v277_v31 = vrot.slane %v270_v15, 7  ;;  %v279_v32 = vrot.slane %v271_v16, 7 }
  0x1a   : > { %796 = vmatprep.subr.bf16.mxu0 %v795_v56  ;;  %v297_v34 = vrot.slane %v272_v28, 1  ;;  %v299_v35 = vrot.slane %v273_v29, 1  ;;  %v278_v40 = vrot.slane %v272_v28, 7  ;;  %v280_v41 = vrot.slane %v273_v29, 7 }
  0x1b   : > { %826 = vmatpush3.bf16.msra.mxu1 %v823_v44  ;;  %v301_v27 = vsel %vm300_vm0, %v296_v21, %v298_v22  ;;  %v284_v36 = vsel %vm281_vm1, %v279_v32, %v277_v31  ;;  %v303_v37 = vsel %vm300_vm0, %v298_v22, %v296_v21  ;;  %v282_v39 = vsel %vm281_vm1, %v277_v31, %v279_v32 }
  0x1c   : > { %828 = vmatprep.subr.bf16.mxu1 %v827_v57  ;;  %769 = vmatprep.mubr.f32.mxu1 %v301_v27  ;;  %v302_v38 = vsel %vm300_vm0, %v297_v34, %v299_v35  ;;  %v304_v42 = vsel %vm300_vm0, %v299_v35, %v297_v34  ;;  %v285_v43 = vsel %vm281_vm1, %v280_v41, %v278_v40 }
  0x1d   : > { %798 = vmatpush3.bf16.msra.mxu0 %v797_v5  ;;  %v283_v44 = vsel %vm281_vm1, %v278_v40, %v280_v41 }
  0x1e   : > { %800 = vmatprep.subr.bf16.mxu0 %v799_v8 }
  0x1f   : > { %830 = vmatpush3.bf16.msra.mxu1 %v827_v57 }
  0x20   : > { %832 = vmatprep.subr.bf16.mxu1 %v831_v11 }
  0x21   : > { %802 = vmatpush3.bf16.msra.mxu0 %v801_v20 }
  0x22   : > { %804 = vmatprep.subr.bf16.mxu0 %v803_v23 }
  0x23   : > { %834 = vmatpush3.bf16.msra.mxu1 %v831_v11 }
  0x24   : > { %836 = vmatprep.subr.bf16.mxu1 %v835_v26 }
  0x25   : > { %806 = vmatpush3.bf16.msra.mxu0 %v805_v30 }
  0x27   : > { %838 = vmatpush3.bf16.msra.mxu1 %v835_v26 }
  0x28   : > { %665 = vmatmul.mubr.msk.f32.vlgmr.msra.gmra.mrb[0].mxu0 %vm286_vm2, %v284_v36 }
  0x29   : > { %432 = vmatprep.mubr.f32.mxu0 %v271_v16 }
  0x2a   : > { %770 = vmatmul.mubr.msk.f32.vlgmr.msra.gmra.mrb[0].mxu1 %vm306_vm3, %v303_v37 }
  0x2b   : > { %772 = vmatprep.mubr.f32.mxu1 %v302_v38 }
  0x2c   : > { %433 = vmatmul.mubr.f32.gmra.mrb[2].mxu0 %v282_v39 }
  0x2d   : > { %437 = vmatprep.mubr.f32.mxu0 %v272_v28 }
  0x2e   : > { %773 = vmatmul.mubr.msk.f32.gmra.mrb[2].mxu1 %vm306_vm3, %v304_v42 }
  0x30   : > { %666 = vmatmul.mubr.msk.f32.gmra.mrb[4].mxu0 %vm286_vm2, %v285_v43 }
  0x31   : > { %442 = vmatprep.mubr.f32.mxu0 %v273_v29 }
  0x34   : > { %443 = vmatmul.mubr.f32.gmra.mrb[6].mxu0 %v283_v44 }
  0xfb   : > { %v705_v45 = vpop.f32.mrb[0].mxu0 }
  0xfc   : > { %v706_v46 = vpop.f32.mrb[1].mxu0 }
  0xfd   : > { %v771_v47 = vpop.f32.mrb[0].mxu1  ;;  %v707_v48 = vadd.f32 %v706_v46, %v705_v45 }
  0xfe   : > { %v514_v49 = vpop.f32.mrb[1].mxu1 }
  0xff   : > { %v515_v50 = vadd.f32 %v707_v48, %v514_v49  ;;  %v708_v51 = vpop.f32.mrb[2].mxu0 }
 0x100   : > { %v709_v52 = vpop.f32.mrb[3].mxu0 }
 0x101   : > { %v774_v53 = vpop.f32.mrb[2].mxu1  ;;  %533 = vst [vmem:[%s238_s20] sm:$0xff] %v515_v50  ;;  %v710_v54 = vadd.f32 %v709_v52, %v708_v51  ;;  %v546_v59 = vmul.f32 %v515_v50, %v515_v50 }
 0x102   : > { %v524_v55 = vpop.f32.mrb[3].mxu1 }
 0x103   : > { %v520_v56 = vadd.f32 %v771_v47, %v710_v54  ;;  %v711_v57 = vpop.f32.mrb[4].mxu0 }
 0x104   : > { %v712_v58 = vpop.f32.mrb[5].mxu0 }
 0x105   : > { %534 = vst [vmem:[%s238_s20 + $0x8] sm:$0xff] %v520_v56  ;;  %v547_v60 = vmul.f32 %v520_v56, %v520_v56  ;;  %v713_v61 = vadd.f32 %v712_v58, %v711_v57  ;;  %v537_v62 = vadd.f32 %v520_v56, %v515_v50 }
 0x107   : > { %v525_v63 = vadd.f32 %v713_v61, %v524_v55  ;;  %v550_v0 = vadd.f32 %v547_v60, %v546_v59  ;;  %v714_v1 = vpop.f32.mrb[6].mxu0 }
 0x108   : > { %v715_v2 = vpop.f32.mrb[7].mxu0 }
 0x109   : > { %535 = vst [vmem:[%s238_s20 + $0x10] sm:$0xff] %v525_v63  ;;  %v538_v3 = vadd.f32 %v537_v62, %v525_v63  ;;  %v548_v4 = vmul.f32 %v525_v63, %v525_v63  ;;  %v716_v5 = vadd.f32 %v715_v2, %v714_v1 }
 0x10b   : > { %v551_v6 = vadd.f32 %v550_v0, %v548_v4  ;;  %v530_v7 = vadd.f32 %v774_v53, %v716_v5 }
 0x10d   : > { %536 = vst [vmem:[%s238_s20 + $0x18] sm:$0xff] %v530_v7  ;;  %v539_v8 = vadd.f32 %v538_v3, %v530_v7  ;;  %v549_v9 = vmul.f32 %v530_v7, %v530_v7 }
 0x10f   : > { %v540_v10 = vrot.slane %v539_v8, 4  ;;  %v552_v11 = vadd.f32 %v551_v6, %v549_v9 }
 0x111   : > { %v541_v12 = vadd.f32 %v540_v10, %v539_v8  ;;  %v553_v13 = vrot.slane %v552_v11, 4 }
 0x113   : > { %v542_v14 = vrot.slane %v541_v12, 2  ;;  %v554_v15 = vadd.f32 %v553_v13, %v552_v11 }
 0x115   : > { %v543_v16 = vadd.f32 %v542_v14, %v541_v12  ;;  %v555_v17 = vrot.slane %v554_v15, 2 }
 0x117   : > { %v544_v18 = vrot.slane %v543_v16, 1  ;;  %v556_v19 = vadd.f32 %v555_v17, %v554_v15 }
 0x119   : > { %v557_v20 = vrot.slane %v556_v19, 1  ;;  %v545_v21 = vadd.f32 %v544_v18, %v543_v16 }
 0x11b   : > { %v558_v22 = vadd.f32 %v557_v20, %v556_v19 }
 0x11d   : > { %v560_v23 = vsel %vm559_vm4, %v545_v21, %v558_v22 }
 0x11e   : > { %561 = vst [vmem:[%s243_s23] sm:$0x3] %v560_v23 }
 0x11f PF: > { %s16_s18 = sadd.s32 1, %s853_s18  }
 0x120   : > { %p13_p5 = scmp.ge.s32.totalorder %s16_s18, 4  }
 0x122   :  { %15 = sbr.rel (!%p13_p5) target bundleno = 1 (0x1), region = 78 }

// kernel: resnet_basic_block.5
= control target key start
LH: loop header
LB: loop body
LE: loop exit
PB: predicated region body
PF: predicated region fallthrough
CT: control target
= control target key end

     0   :  { %s1136_s18 = smov 0   ;;  %s1515_s0 = inlined_call_operand.vmem [shape: f32[4,16,128], index: 0, kind: input, shape index: {}]   ;;  %s1516_s1 = inlined_call_operand.vmem [shape: f32[1,1,128], index: 1, kind: input, shape index: {}]   ;;  %s1517_s2 = inlined_call_operand.vmem [shape: f32[1,1,128], index: 2, kind: input, shape index: {}]   ;;  %s1518_s3 = inlined_call_operand.vmem [shape: f32[640,128], index: 3, kind: input, shape index: {}]   ;;  %s1519_s4 = inlined_call_operand.vmem [shape: f32[4,16,128], index: 4, kind: output, shape index: {0}]   ;;  %s1520_s5 = inlined_call_operand.vmem [shape: f32[2,2,128], index: 5, kind: output, shape index: {1}]  }
   0x1 LB: > { %s1142_s19 = sadd.s32 4294967295, %s1104_s18   ;;  %p810_p0 = scmp.ge.s32.totalorder %s1104_s18, 1  ;;  %s1104_s18 = sphi %s1136_s18, %s16_s18  }
   0x2   : > { %p192_p1 = scmp.lt.s32.totalorder %s1104_s18, 3 }
   0x4   : > { %p193_p2 = pnand %p810_p0, %p192_p1 }
   0x5   : > { %v369_v0 = vld [vmem:[%s1518_s3 + $0x80] sm:$0xff] (!%p193_p2)  ;;  %v370_v1 = vld [vmem:[%s1518_s3 + $0x88] sm:$0xff] (!%p193_p2)  ;;  %v371_v11 = vld [vmem:[%s1518_s3 + $0x90] sm:$0xff] (!%p193_p2)  ;;  %s811_s27 = sshll.u32 (!%p193_p2), %s1142_s19, 1  ;;  %p240_p4 = scmp.lt.s32.totalorder (!%p193_p2), %s1142_s19, 1  ;;  %vm714_vm8 = vcmask (!%p193_p2), 1040384  }
   0x6   : > { %196 = sbr.rel (%p193_p2) target bundleno = 310 (0x136), region = 36  ;;  %v401_v2 = vld [vmem:[%s1518_s3 + $0x180] sm:$0xff] (!%p193_p2)  ;;  %v978_v3 = vpack.c.bf16 (!%p193_p2), %v370_v1, %v369_v0  ;;  %v402_v4 = vld [vmem:[%s1518_s3 + $0x188] sm:$0xff] (!%p193_p2)  ;;  %v372_v13 = vld [vmem:[%s1518_s3 + $0x98] sm:$0xff] (!%p193_p2)  ;;  %p1221_p3 = scmp.lt.s32.totalorder (!%p193_p2), %s811_s27, 3 }
   0x7   : > { %v353_v5 = vld [vmem:[%s1518_s3] sm:$0xff] (!%p193_p2)  ;;  %v354_v6 = vld [vmem:[%s1518_s3 + $0x8] sm:$0xff] (!%p193_p2)  ;;  %v1010_v7 = vpack.c.bf16 (!%p193_p2), %v402_v4, %v401_v2  ;;  %v403_v14 = vld [vmem:[%s1518_s3 + $0x190] sm:$0xff] (!%p193_p2)  ;;  %v982_v16 = vpack.c.bf16 (!%p193_p2), %v372_v13, %v371_v11  ;;  %v274_v4 = vlaneseq (!%p193_p2) }
   0x8   : > { %v980_v8 = vpack.c.bf16 (!%p193_p2), %v354_v6, %v353_v5  ;;  %v385_v9 = vld [vmem:[%s1518_s3 + $0x100] sm:$0xff] (!%p193_p2)  ;;  %v386_v10 = vld [vmem:[%s1518_s3 + $0x108] sm:$0xff] (!%p193_p2)  ;;  %979 = vmatprep.subr.bf16.mxu0 (!%p193_p2), %v978_v3  ;;  %v404_v15 = vld [vmem:[%s1518_s3 + $0x198] sm:$0xff] (!%p193_p2) }
   0x9   : > { %v1012_v12 = vpack.c.bf16 (!%p193_p2), %v386_v10, %v385_v9  ;;  %1011 = vmatprep.subr.bf16.mxu1 (!%p193_p2), %v1010_v7  ;;  %v1014_v17 = vpack.c.bf16 (!%p193_p2), %v404_v15, %v403_v14  ;;  %v355_v18 = vld [vmem:[%s1518_s3 + $0x10] sm:$0xff] (!%p193_p2)  ;;  %v356_v19 = vld [vmem:[%s1518_s3 + $0x18] sm:$0xff] (!%p193_p2)  ;;  %v373_v23 = vld [vmem:[%s1518_s3 + $0xa0] sm:$0xff] (!%p193_p2) }
   0xa   : > { %981 = vmatpush3.bf16.msra.mxu0 (!%p193_p2), %v980_v8  ;;  %v387_v20 = vld [vmem:[%s1518_s3 + $0x110] sm:$0xff] (!%p193_p2)  ;;  %v984_v21 = vpack.c.bf16 (!%p193_p2), %v356_v19, %v355_v18  ;;  %v388_v22 = vld [vmem:[%s1518_s3 + $0x118] sm:$0xff] (!%p193_p2)  ;;  %v374_v24 = vld [vmem:[%s1518_s3 + $0xa8] sm:$0xff] (!%p193_p2) }
   0xb   : > { %1013 = vmatpush3.bf16.msra.mxu1 (!%p193_p2), %v1012_v12  ;;  %983 = vmatprep.subr.bf16.mxu0 (!%p193_p2), %v982_v16  ;;  %v1016_v25 = vpack.c.bf16 (!%p193_p2), %v388_v22, %v387_v20  ;;  %v986_v26 = vpack.c.bf16 (!%p193_p2), %v374_v24, %v373_v23  ;;  %v405_v27 = vld [vmem:[%s1518_s3 + $0x1a0] sm:$0xff] (!%p193_p2)  ;;  %v406_v28 = vld [vmem:[%s1518_s3 + $0x1a8] sm:$0xff] (!%p193_p2)  ;;  %v375_v35 = vld [vmem:[%s1518_s3 + $0xb0] sm:$0xff] (!%p193_p2) }
   0xc   : > { %1015 = vmatprep.subr.bf16.mxu1 (!%p193_p2), %v1014_v17  ;;  %v357_v29 = vld [vmem:[%s1518_s3 + $0x20] sm:$0xff] (!%p193_p2)  ;;  %v1018_v30 = vpack.c.bf16 (!%p193_p2), %v406_v28, %v405_v27  ;;  %v358_v31 = vld [vmem:[%s1518_s3 + $0x28] sm:$0xff] (!%p193_p2)  ;;  %v376_v36 = vld [vmem:[%s1518_s3 + $0xb8] sm:$0xff] (!%p193_p2) }
   0xd   : > { %v389_v32 = vld [vmem:[%s1518_s3 + $0x120] sm:$0xff]  ;;  %v390_v33 = vld [vmem:[%s1518_s3 + $0x128] sm:$0xff]  ;;  %v988_v34 = vpack.c.bf16 %v358_v31, %v357_v29  ;;  %v407_v37 = vld [vmem:[%s1518_s3 + $0x1b0] sm:$0xff]  ;;  %v990_v39 = vpack.c.bf16 %v376_v36, %v375_v35  ;;  %s1523_s27 = smov (!%p1221_p3, %s811_s27), 3  ;;  %s1525_s19 = smov (!%p240_p4, %s1142_s19), 1 }
   0xe   : > { %985 = vmatpush3.bf16.msra.mxu0 %v984_v21  ;;  %v1020_v38 = vpack.c.bf16 %v390_v33, %v389_v32  ;;  %v408_v40 = vld [vmem:[%s1518_s3 + $0x1b8] sm:$0xff]  ;;  %v359_v41 = vld [vmem:[%s1518_s3 + $0x30] sm:$0xff]  ;;  %v377_v46 = vld [vmem:[%s1518_s3 + $0xc0] sm:$0xff]  ;;  %s830_s20 = sshll.u32 %s1523_s27, 4  ;;  %v1340_v21 = vshrl.u32 %v274_v4, 7  ;;  %s817_s27 = sshll.u32 %s1525_s19, 1 }
   0xf   : > { %1017 = vmatpush3.bf16.msra.mxu1 %v1016_v25  ;;  %987 = vmatprep.subr.bf16.mxu0 %v986_v26  ;;  %v360_v42 = vld [vmem:[%s1518_s3 + $0x38] sm:$0xff]  ;;  %v1022_v43 = vpack.c.bf16 %v408_v40, %v407_v37  ;;  %v391_v44 = vld [vmem:[%s1518_s3 + $0x130] sm:$0xff]  ;;  %v378_v47 = vld [vmem:[%s1518_s3 + $0xc8] sm:$0xff]  ;;  %s1315_s11 = scalar_lea.vmem %s1515_s0, %s830_s20  ;;  %s238_s16 = scalar_lea.vmem %s1519_s4, %s830_s20 }
  0x10   : > { %1019 = vmatprep.subr.bf16.mxu1 %v1018_v30  ;;  %v392_v45 = vld [vmem:[%s1518_s3 + $0x138] sm:$0xff]  ;;  %v409_v48 = vld [vmem:[%s1518_s3 + $0x1c0] sm:$0xff]  ;;  %v410_v49 = vld [vmem:[%s1518_s3 + $0x1c8] sm:$0xff]  ;;  %v992_v50 = vpack.c.bf16 %v360_v42, %v359_v41  ;;  %v994_v52 = vpack.c.bf16 %v378_v47, %v377_v46  ;;  %vm300_vm0 = vcmp.lt.s32.totalorder %v1340_v21, 1  ;;  %vm305_vm1 = vcmp.ge.s32.totalorder %v1340_v21, 1  ;;  %s243_s21 = scalar_lea.vmem %s1520_s5, %s817_s27 }
  0x11   : > { %v1024_v51 = vpack.c.bf16 %v392_v45, %v391_v44  ;;  %v361_v53 = vld [vmem:[%s1518_s3 + $0x40] sm:$0xff]  ;;  %v362_v54 = vld [vmem:[%s1518_s3 + $0x48] sm:$0xff]  ;;  %v1026_v56 = vpack.c.bf16 %v410_v49, %v409_v48  ;;  %v379_v58 = vld [vmem:[%s1518_s3 + $0xd0] sm:$0xff]  ;;  %vm319_vm2 = vcmp.lt.s32.totalorder %v1340_v21, 7  ;;  %vm281_vm3 = vcmp.lt.s32.totalorder %v1340_v21, 2 }
  0x12   : > { %989 = vmatpush3.bf16.msra.mxu0 %v988_v34  ;;  %v393_v55 = vld [vmem:[%s1518_s3 + $0x140] sm:$0xff]  ;;  %v394_v57 = vld [vmem:[%s1518_s3 + $0x148] sm:$0xff]  ;;  %v380_v59 = vld [vmem:[%s1518_s3 + $0xd8] sm:$0xff]  ;;  %v996_v62 = vpack.c.bf16 %v362_v54, %v361_v53  ;;  %v1385_v45 = vadd.s32 8, %v1340_v21  ;;  %vm286_vm4 = vcmp.ge.s32.totalorder %v1340_v21, 2  ;;  %vm338_vm6 = vcmp.lt.s32.totalorder %v1340_v21, 6 }
  0x13   : > { %1021 = vmatpush3.bf16.msra.mxu1 %v1020_v38  ;;  %991 = vmatprep.subr.bf16.mxu0 %v990_v39  ;;  %v411_v60 = vld [vmem:[%s1518_s3 + $0x1d0] sm:$0xff]  ;;  %v412_v61 = vld [vmem:[%s1518_s3 + $0x1d8] sm:$0xff]  ;;  %v1028_v63 = vpack.c.bf16 %v394_v57, %v393_v55  ;;  %v998_v0 = vpack.c.bf16 %v380_v59, %v379_v58  ;;  %v381_v7 = vld [vmem:[%s1518_s3 + $0xe0] sm:$0xff] }
  0x14   : > { %1023 = vmatprep.subr.bf16.mxu1 %v1022_v43  ;;  %v363_v1 = vld [vmem:[%s1518_s3 + $0x50] sm:$0xff]  ;;  %v364_v2 = vld [vmem:[%s1518_s3 + $0x58] sm:$0xff]  ;;  %v1030_v5 = vpack.c.bf16 %v412_v61, %v411_v60  ;;  %v382_v8 = vld [vmem:[%s1518_s3 + $0xe8] sm:$0xff]  ;;  %vm325_vm5 = vcmp.lt.s32.totalorder %v1385_v45, 15  ;;  %vm344_vm7 = vcmp.lt.s32.totalorder %v1385_v45, 14 }
  0x15   : > { %v395_v3 = vld [vmem:[%s1518_s3 + $0x150] sm:$0xff]  ;;  %v396_v6 = vld [vmem:[%s1518_s3 + $0x158] sm:$0xff]  ;;  %v413_v9 = vld [vmem:[%s1518_s3 + $0x1e0] sm:$0xff]  ;;  %v1000_v12 = vpack.c.bf16 %v364_v2, %v363_v1  ;;  %v1002_v17 = vpack.c.bf16 %v382_v8, %v381_v7 }
  0x16   : > { %993 = vmatpush3.bf16.msra.mxu0 %v992_v50  ;;  %v414_v10 = vld [vmem:[%s1518_s3 + $0x1e8] sm:$0xff]  ;;  %v365_v11 = vld [vmem:[%s1518_s3 + $0x60] sm:$0xff]  ;;  %v1032_v16 = vpack.c.bf16 %v396_v6, %v395_v3  ;;  %v383_v18 = vld [vmem:[%s1518_s3 + $0xf0] sm:$0xff] }
  0x17   : > { %1025 = vmatpush3.bf16.msra.mxu1 %v1024_v51  ;;  %995 = vmatprep.subr.bf16.mxu0 %v994_v52  ;;  %v366_v13 = vld [vmem:[%s1518_s3 + $0x68] sm:$0xff]  ;;  %v397_v14 = vld [vmem:[%s1518_s3 + $0x160] sm:$0xff]  ;;  %v1034_v22 = vpack.c.bf16 %v414_v10, %v413_v9  ;;  %v384_v23 = vld [vmem:[%s1518_s3 + $0xf8] sm:$0xff] }
  0x18   : > { %1027 = vmatprep.subr.bf16.mxu1 %v1026_v56  ;;  %v398_v15 = vld [vmem:[%s1518_s3 + $0x168] sm:$0xff]  ;;  %v244_v19 = vld [vmem:[%s1315_s11] sm:$0xff]  ;;  %v415_v26 = vld [vmem:[%s1518_s3 + $0x1f0] sm:$0xff]  ;;  %v1004_v30 = vpack.c.bf16 %v366_v13, %v365_v11  ;;  %v1006_v35 = vpack.c.bf16 %v384_v23, %v383_v18 }
  0x19   : > { %v245_v20 = vld [vmem:[%s1315_s11 + $0x8] sm:$0xff]  ;;  %v818_v24 = vld [vmem:[%s1516_s1] ss:$0 sm:$0xff]  ;;  %v416_v27 = vld [vmem:[%s1518_s3 + $0x1f8] sm:$0xff]  ;;  %v1036_v31 = vpack.c.bf16 %v398_v15, %v397_v14 }
  0x1a   : > { %997 = vmatpush3.bf16.msra.mxu0 %v996_v62  ;;  %v819_v25 = vld [vmem:[%s1517_s2] ss:$0 sm:$0xff]  ;;  %v255_v28 = vmul.f32 %v818_v24, %v244_v19  ;;  %v256_v29 = vmul.f32 %v818_v24, %v245_v20  ;;  %v367_v32 = vld [vmem:[%s1518_s3 + $0x70] sm:$0xff]  ;;  %v368_v33 = vld [vmem:[%s1518_s3 + $0x78] sm:$0xff]  ;;  %v1038_v41 = vpack.c.bf16 %v416_v27, %v415_v26 }
  0x1b   : > { %1029 = vmatpush3.bf16.msra.mxu1 %v1028_v63  ;;  %999 = vmatprep.subr.bf16.mxu0 %v998_v0  ;;  %v399_v34 = vld [vmem:[%s1518_s3 + $0x170] sm:$0xff]  ;;  %v400_v36 = vld [vmem:[%s1518_s3 + $0x178] sm:$0xff]  ;;  %v417_v39 = vld [vmem:[%s1518_s3 + $0x200] sm:$0xff]  ;;  %v1008_v48 = vpack.c.bf16 %v368_v33, %v367_v32 }
  0x1c   : > { %1031 = vmatprep.subr.bf16.mxu1 %v1030_v5  ;;  %v266_v37 = vadd.f32 %v819_v25, %v255_v28  ;;  %v267_v38 = vadd.f32 %v819_v25, %v256_v29  ;;  %v418_v40 = vld [vmem:[%s1518_s3 + $0x208] sm:$0xff]  ;;  %v246_v42 = vld [vmem:[%s1315_s11 + $0x10] sm:$0xff]  ;;  %v247_v46 = vld [vmem:[%s1315_s11 + $0x18] sm:$0xff]  ;;  %v1040_v49 = vpack.c.bf16 %v400_v36, %v399_v34 }
  0x1d   : > { %v257_v47 = vmul.f32 %v818_v24, %v246_v42  ;;  %v1042_v50 = vpack.c.bf16 %v418_v40, %v417_v39  ;;  %v258_v51 = vmul.f32 %v818_v24, %v247_v46  ;;  %v419_v58 = vld [vmem:[%s1518_s3 + $0x210] sm:$0xff]  ;;  %v420_v59 = vld [vmem:[%s1518_s3 + $0x218] sm:$0xff]  ;;  %v421_v4 = vld [vmem:[%s1518_s3 + $0x220] sm:$0xff] }
  0x1e   : > { %1001 = vmatpush3.bf16.msra.mxu0 %v1000_v12  ;;  %v1380_v43 = vmax.f32 %v266_v37, 0.0  ;;  %v1382_v44 = vmax.f32 %v267_v38, 0.0  ;;  %v1046_v3 = vpack.c.bf16 %v420_v59, %v419_v58  ;;  %v422_v5 = vld [vmem:[%s1518_s3 + $0x228] sm:$0xff]  ;;  %v425_v23 = vld [vmem:[%s1518_s3 + $0x240] sm:$0xff]  ;;  %v427_v33 = vld [vmem:[%s1518_s3 + $0x250] sm:$0xff] }
  0x1f   : > { %1033 = vmatpush3.bf16.msra.mxu1 %v1032_v16  ;;  %1003 = vmatprep.subr.bf16.mxu0 %v1002_v17  ;;  %v268_v60 = vadd.f32 %v819_v25, %v257_v47  ;;  %v269_v61 = vadd.f32 %v819_v25, %v258_v51  ;;  %v1050_v15 = vpack.c.bf16 %v422_v5, %v421_v4  ;;  %v423_v16 = vld [vmem:[%s1518_s3 + $0x230] sm:$0xff]  ;;  %v424_v17 = vld [vmem:[%s1518_s3 + $0x238] sm:$0xff]  ;;  %v426_v24 = vld [vmem:[%s1518_s3 + $0x248] sm:$0xff] }
  0x20   : > { %1035 = vmatprep.subr.bf16.mxu1 %v1034_v22  ;;  %v296_v52 = vrot.slane %v1380_v43, 7  ;;  %v298_v53 = vrot.slane %v1382_v44, 7  ;;  %v315_v54 = vrot.slane %v1380_v43, 1  ;;  %v317_v55 = vrot.slane %v1382_v44, 1  ;;  %v428_v34 = vld [vmem:[%s1518_s3 + $0x258] sm:$0xff]  ;;  %v429_v38 = vld [vmem:[%s1518_s3 + $0x260] sm:$0xff] }
  0x21   : > { %v277_v56 = vrot.slane %v1380_v43, 6  ;;  %v279_v57 = vrot.slane %v1382_v44, 6  ;;  %v1409_v1 = vmax.f32 %v268_v60, 0.0  ;;  %v1411_v2 = vmax.f32 %v269_v61, 0.0  ;;  %v430_v39 = vld [vmem:[%s1518_s3 + $0x268] sm:$0xff]  ;;  %v432_v42 = vld [vmem:[%s1518_s3 + $0x278] sm:$0xff] }
  0x22   : > { %1005 = vmatpush3.bf16.msra.mxu0 %v1004_v30  ;;  %v303_v62 = vsel %vm300_vm0, %v298_v53, %v296_v52  ;;  %v320_v63 = vsel %vm319_vm2, %v315_v54, %v317_v55  ;;  %v301_v6 = vsel %vm300_vm0, %v296_v52, %v298_v53  ;;  %v322_v7 = vsel %vm319_vm2, %v317_v55, %v315_v54 }
  0x23   : > { %1037 = vmatpush3.bf16.msra.mxu1 %v1036_v31  ;;  %1007 = vmatprep.subr.bf16.mxu0 %v1006_v35  ;;  %v284_v0 = vsel %vm281_vm3, %v279_v57, %v277_v56  ;;  %v282_v8 = vsel %vm281_vm3, %v277_v56, %v279_v57  ;;  %v297_v9 = vrot.slane %v1409_v1, 7  ;;  %v299_v10 = vrot.slane %v1411_v2, 7 }
  0x24   : > { %1039 = vmatprep.subr.bf16.mxu1 %v1038_v41  ;;  %820 = vmatprep.mubr.msk.f32.mxu0 %vm305_vm1, %v303_v62  ;;  %v316_v11 = vrot.slane %v1409_v1, 1  ;;  %v318_v12 = vrot.slane %v1411_v2, 1  ;;  %v278_v13 = vrot.slane %v1409_v1, 6  ;;  %v280_v14 = vrot.slane %v1411_v2, 6  ;;  %v431_v41 = vld [vmem:[%s1518_s3 + $0x270] sm:$0xff] }
  0x25   : > { %582 = vmatprep.mubr.f32.mxu1 %v320_v63  ;;  %v304_v18 = vsel %vm300_vm0, %v299_v10, %v297_v9  ;;  %v1054_v22 = vpack.c.bf16 %v424_v17, %v423_v16  ;;  %v302_v25 = vsel %vm300_vm0, %v297_v9, %v299_v10  ;;  %v334_v26 = vrot.slane %v1380_v43, 2 }
  0x26   : > { %1009 = vmatpush3.bf16.msra.mxu0 %v1008_v48  ;;  %v321_v19 = vsel %vm319_vm2, %v316_v11, %v318_v12  ;;  %v285_v20 = vsel %vm281_vm3, %v280_v14, %v278_v13  ;;  %v336_v27 = vrot.slane %v1382_v44, 2  ;;  %v323_v28 = vsel %vm319_vm2, %v318_v12, %v316_v11 }
  0x27   : > { %1041 = vmatpush3.bf16.msra.mxu1 %v1040_v49  ;;  %1043 = vmatprep.subr.bf16.mxu0 %v1042_v50  ;;  %v283_v29 = vsel %vm281_vm3, %v278_v13, %v280_v14  ;;  %v335_v30 = vrot.slane %v1409_v1, 2  ;;  %v337_v31 = vrot.slane %v1411_v2, 2  ;;  %v1058_v32 = vpack.c.bf16 %v426_v24, %v425_v23 }
  0x28   : > { %1074 = vmatprep.subr.bf16.mxu1 %v1042_v50  ;;  %v339_v35 = vsel %vm338_vm6, %v334_v26, %v336_v27  ;;  %v1062_v37 = vpack.c.bf16 %v428_v34, %v427_v33  ;;  %v1066_v40 = vpack.c.bf16 %v430_v39, %v429_v38 }
  0x29   : > { %821 = vmatmul.mubr.msk.f32.vlgmr.msra.gmra.mrb[0].mxu0 %vm286_vm4, %v284_v0  ;;  %v340_v36 = vsel %vm338_vm6, %v335_v30, %v337_v31  ;;  %v342_v46 = vsel %vm338_vm6, %v337_v31, %v335_v30 }
  0x2a   : > { %583 = vmatmul.mubr.f32.vlgmr.msra.gmra.mrb[0].mxu1 %v1380_v43  ;;  %1045 = vmatpush3.bf16.msra.mxu0 %v1042_v50  ;;  %v1070_v43 = vpack.c.bf16 %v432_v42, %v431_v41 }
  0x2b   : > { %1082 = vmatpush3.bf16.msra.mxu1 %v1042_v50  ;;  %1047 = vmatprep.subr.bf16.mxu0 %v1046_v3 }
  0x2c   : > { %1075 = vmatprep.subr.bf16.mxu1 %v1046_v3  ;;  %502 = vmatprep.mubr.f32.mxu0 %v301_v6 }
  0x2d   : > { %824 = vmatprep.mubr.msk.f32.mxu1 %vm325_vm5, %v322_v7  ;;  %503 = vmatmul.mubr.f32.gmra.mrb[2].mxu0 %v282_v8 }
  0x2e   : > { %1049 = vmatpush3.bf16.msra.mxu0 %v1046_v3  ;;  %588 = vmatmul.mubr.f32.gmra.mrb[2].mxu1 %v1382_v44  ;;  %v341_v44 = vsel %vm338_vm6, %v336_v27, %v334_v26 }
  0x2f   : > { %1083 = vmatpush3.bf16.msra.mxu1 %v1046_v3  ;;  %1051 = vmatprep.subr.bf16.mxu0 %v1050_v15 }
  0x30   : > { %1076 = vmatprep.subr.bf16.mxu1 %v1050_v15  ;;  %822 = vmatprep.mubr.msk.f32.mxu0 %vm305_vm1, %v304_v18 }
  0x31   : > { %592 = vmatprep.mubr.f32.mxu1 %v321_v19  ;;  %823 = vmatmul.mubr.msk.f32.gmra.mrb[4].mxu0 %vm286_vm4, %v285_v20 }
  0x32   : > { %1053 = vmatpush3.bf16.msra.mxu0 %v1050_v15  ;;  %593 = vmatmul.mubr.f32.gmra.mrb[4].mxu1 %v1409_v1 }
  0x33   : > { %1084 = vmatpush3.bf16.msra.mxu1 %v1050_v15  ;;  %1055 = vmatprep.subr.bf16.mxu0 %v1054_v22 }
  0x34   : > { %1077 = vmatprep.subr.bf16.mxu1 %v1054_v22  ;;  %512 = vmatprep.mubr.f32.mxu0 %v302_v25 }
  0x35   : > { %825 = vmatprep.mubr.msk.f32.mxu1 %vm325_vm5, %v323_v28  ;;  %513 = vmatmul.mubr.f32.gmra.mrb[6].mxu0 %v283_v29 }
  0x36   : > { %1057 = vmatpush3.bf16.msra.mxu0 %v1054_v22  ;;  %598 = vmatmul.mubr.f32.gmra.mrb[6].mxu1 %v1411_v2 }
  0x37   : > { %1085 = vmatpush3.bf16.msra.mxu1 %v1054_v22  ;;  %1059 = vmatprep.subr.bf16.mxu0 %v1058_v32 }
  0x38   : > { %1078 = vmatprep.subr.bf16.mxu1 %v1058_v32  ;;  %972 = vmatprep.mubr.f32.mxu0 %v339_v35 }
  0x39   : > { %975 = vmatprep.mubr.f32.mxu1 %v340_v36 }
  0x3a   : > { %1061 = vmatpush3.bf16.msra.mxu0 %v1058_v32 }
  0x3b   : > { %1086 = vmatpush3.bf16.msra.mxu1 %v1058_v32  ;;  %1063 = vmatprep.subr.bf16.mxu0 %v1062_v37 }
  0x3c   : > { %1079 = vmatprep.subr.bf16.mxu1 %v1062_v37 }
  0x3e   : > { %1065 = vmatpush3.bf16.msra.mxu0 %v1062_v37 }
  0x3f   : > { %1087 = vmatpush3.bf16.msra.mxu1 %v1062_v37  ;;  %1067 = vmatprep.subr.bf16.mxu0 %v1066_v40 }
  0x40   : > { %1080 = vmatprep.subr.bf16.mxu1 %v1066_v40 }
  0x42   : > { %1069 = vmatpush3.bf16.msra.mxu0 %v1066_v40 }
  0x43   : > { %1088 = vmatpush3.bf16.msra.mxu1 %v1066_v40  ;;  %1071 = vmatprep.subr.bf16.mxu0 %v1070_v43 }
  0x44   : > { %1081 = vmatprep.subr.bf16.mxu1 %v1070_v43 }
  0x46   : > { %1073 = vmatpush3.bf16.msra.mxu0 %v1070_v43 }
  0x47   : > { %1089 = vmatpush3.bf16.msra.mxu1 %v1070_v43 }
  0x49   : > { %973 = vmatmul.mubr.msk.f32.vlgmr.msra.gmra.mrb[8].mxu0 %vm344_vm7, %v341_v44 }
  0x4a   : > { %976 = vmatmul.mubr.msk.f32.vlgmr.msra.gmra.mrb[8].mxu1 %vm344_vm7, %v342_v46 }
  0xfc   : > { %v864_v47 = vpop.f32.mrb[0].mxu0 }
  0xfd   : > { %v908_v48 = vpop.f32.mrb[0].mxu1  ;;  %v865_v49 = vpop.f32.mrb[1].mxu0 }
  0xfe   : > { %v866_v50 = vadd.f32 %v865_v49, %v864_v47  ;;  %v909_v51 = vpop.f32.mrb[1].mxu1 }
  0xff   : > { %v910_v52 = vadd.f32 %v909_v51, %v908_v48 }
 0x100   : > { %v867_v53 = vpop.f32.mrb[2].mxu0 }
 0x101   : > { %v911_v54 = vpop.f32.mrb[2].mxu1  ;;  %v868_v55 = vpop.f32.mrb[3].mxu0  ;;  %v585_v45 = vadd.f32 %v910_v52, %v866_v50 }
 0x102   : > { %v869_v56 = vadd.f32 %v868_v55, %v867_v53  ;;  %v912_v57 = vpop.f32.mrb[3].mxu1 }
 0x103   : > { %v913_v58 = vadd.f32 %v912_v57, %v911_v54 }
 0x104   : > { %v870_v59 = vpop.f32.mrb[4].mxu0 }
 0x105   : > { %v914_v60 = vpop.f32.mrb[4].mxu1  ;;  %v871_v21 = vpop.f32.mrb[5].mxu0  ;;  %v590_v61 = vadd.f32 %v913_v58, %v869_v56 }
 0x106   : > { %v872_v62 = vadd.f32 %v871_v21, %v870_v59  ;;  %v915_v63 = vpop.f32.mrb[5].mxu1 }
 0x107   : > { %v916_v0 = vadd.f32 %v915_v63, %v914_v60 }
 0x108   : > { %v873_v1 = vpop.f32.mrb[6].mxu0 }
 0x109   : > { %v917_v2 = vpop.f32.mrb[6].mxu1  ;;  %v874_v3 = vpop.f32.mrb[7].mxu0  ;;  %v595_v4 = vadd.f32 %v916_v0, %v872_v62 }
 0x10a   : > { %v875_v5 = vadd.f32 %v874_v3, %v873_v1  ;;  %v918_v6 = vpop.f32.mrb[7].mxu1 }
 0x10b   : > { %v919_v7 = vadd.f32 %v918_v6, %v917_v2 }
 0x10d   : > { %v600_v8 = vadd.f32 %v919_v7, %v875_v5 }
 0x11c   : > { %v974_v9 = vpop.f32.mrb[8].mxu0 }
 0x11d   : > { %v675_v10 = vadd.f32 %v974_v9, %v590_v61  ;;  %v977_v11 = vpop.f32.mrb[8].mxu1  ;;  %v669_v12 = vpop.f32.mrb[9].mxu0 }
 0x11e   : > { %v685_v13 = vadd.f32 %v977_v11, %v600_v8  ;;  %v670_v14 = vadd.f32 %v669_v12, %v585_v45  ;;  %v679_v15 = vpop.f32.mrb[9].mxu1 }
 0x11f   : > { %689 = vst [vmem:[%s238_s16 + $0x8] sm:$0xff] %v675_v10  ;;  %v702_v16 = vmul.f32 %v675_v10, %v675_v10  ;;  %v680_v17 = vadd.f32 %v679_v15, %v595_v4 }
 0x120   : > { %691 = vst [vmem:[%s238_s16 + $0x18] sm:$0xff] %v685_v13  ;;  %688 = vst [vmem:[%s238_s16] sm:$0xff] %v670_v14  ;;  %v692_v18 = vadd.f32 %v675_v10, %v670_v14  ;;  %v701_v19 = vmul.f32 %v670_v14, %v670_v14  ;;  %v704_v24 = vmul.f32 %v685_v13, %v685_v13 }
 0x121   : > { %690 = vst [vmem:[%s238_s16 + $0x10] sm:$0xff] %v680_v17  ;;  %v703_v23 = vmul.f32 %v680_v17, %v680_v17 }
 0x122   : > { %v705_v20 = vadd.f32 %v702_v16, %v701_v19  ;;  %v693_v22 = vadd.f32 %v692_v18, %v680_v17 }
 0x124   : > { %v694_v25 = vadd.f32 %v693_v22, %v685_v13  ;;  %v706_v26 = vadd.f32 %v705_v20, %v703_v23 }
 0x126   : > { %v695_v27 = vrot.slane %v694_v25, 4  ;;  %v707_v28 = vadd.f32 %v706_v26, %v704_v24 }
 0x128   : > { %v696_v29 = vadd.f32 %v695_v27, %v694_v25  ;;  %v708_v30 = vrot.slane %v707_v28, 4 }
 0x12a   : > { %v697_v31 = vrot.slane %v696_v29, 2  ;;  %v709_v32 = vadd.f32 %v708_v30, %v707_v28 }
 0x12c   : > { %v698_v33 = vadd.f32 %v697_v31, %v696_v29  ;;  %v710_v34 = vrot.slane %v709_v32, 2 }
 0x12e   : > { %v699_v35 = vrot.slane %v698_v33, 1  ;;  %v711_v36 = vadd.f32 %v710_v34, %v709_v32 }
 0x130   : > { %v712_v37 = vrot.slane %v711_v36, 1  ;;  %v700_v38 = vadd.f32 %v699_v35, %v698_v33 }
 0x132   : > { %v713_v39 = vadd.f32 %v712_v37, %v711_v36 }
 0x134   : > { %v715_v40 = vsel %vm714_vm8, %v700_v38, %v713_v39 }
 0x135   : > { %716 = vst [vmem:[%s243_s21] sm:$0x3] %v715_v40 }
 0x136 PF: > { %s16_s18 = sadd.s32 1, %s1104_s18  }
 0x137   : > { %p13_p5 = scmp.ge.s32.totalorder %s16_s18, 4  }
 0x139   :  { %15 = sbr.rel (!%p13_p5) target bundleno = 1 (0x1), region = 78 }

// kernel: resnet_basic_block.4
= control target key start
LH: loop header
LB: loop body
LE: loop exit
PB: predicated region body
PF: predicated region fallthrough
CT: control target
= control target key end

     0   :  { %s1779_s27 = smov 0   ;;  %s2376_s0 = inlined_call_operand.vmem [shape: f32[4,16,128], index: 0, kind: input, shape index: {}]   ;;  %s2377_s1 = inlined_call_operand.vmem [shape: f32[1,1,128], index: 1, kind: input, shape index: {}]   ;;  %s2378_s2 = inlined_call_operand.vmem [shape: f32[1,1,128], index: 2, kind: input, shape index: {}]   ;;  %s2379_s3 = inlined_call_operand.vmem [shape: f32[896,128], index: 3, kind: input, shape index: {}]   ;;  %s2380_s4 = inlined_call_operand.vmem [shape: f32[128,128], index: 4, kind: input, shape index: {}]   ;;  %s2381_s5 = inlined_call_operand.vmem [shape: f32[4,16,128], index: 5, kind: output, shape index: {0}]   ;;  %s2382_s6 = inlined_call_operand.vmem [shape: f32[2,2,128], index: 6, kind: output, shape index: {1}]   ;;  %s2383_s7 = inlined_call_operand.vmem [shape: f32[4,16,128], index: 7, kind: output, shape index: {2}]   ;;  %s2384_s8 = inlined_call_operand.vmem [shape: f32[2,2,128], index: 8, kind: output, shape index: {3}]  }
   0x1 LB: > { %s1785_s28 = sadd.s32 4294967295, %s1732_s27   ;;  %p1263_p0 = scmp.ge.s32.totalorder %s1732_s27, 1  ;;  %s1732_s27 = sphi %s1779_s27, %s19_s27  }
   0x2   : > { %p271_p1 = scmp.lt.s32.totalorder %s1732_s27, 3 }
   0x4   : > { %p272_p2 = pnand %p1263_p0, %p271_p1 }
   0x5   : > { %v509_v0 = vld [vmem:[%s2379_s3 + $0x80] sm:$0xff] (!%p272_p2)  ;;  %v510_v1 = vld [vmem:[%s2379_s3 + $0x88] sm:$0xff] (!%p272_p2)  ;;  %v511_v11 = vld [vmem:[%s2379_s3 + $0x90] sm:$0xff] (!%p272_p2)  ;;  %s1264_s17 = sshll.u32 (!%p272_p2), %s1785_s28, 1  ;;  %p335_p4 = scmp.lt.s32.totalorder (!%p272_p2), %s1785_s28, 1  ;;  %vm971_vm12 = vcmask (!%p272_p2), 1040384  }
   0x6   : > { %275 = sbr.rel (%p272_p2) target bundleno = 340 (0x154), region = 40  ;;  %v541_v2 = vld [vmem:[%s2379_s3 + $0x180] sm:$0xff] (!%p272_p2)  ;;  %v1542_v3 = vpack.c.bf16 (!%p272_p2), %v510_v1, %v509_v0  ;;  %v542_v4 = vld [vmem:[%s2379_s3 + $0x188] sm:$0xff] (!%p272_p2)  ;;  %v512_v13 = vld [vmem:[%s2379_s3 + $0x98] sm:$0xff] (!%p272_p2)  ;;  %p1864_p3 = scmp.lt.s32.totalorder (!%p272_p2), %s1264_s17, 3 }
   0x7   : > { %v493_v5 = vld [vmem:[%s2379_s3] sm:$0xff] (!%p272_p2)  ;;  %v494_v6 = vld [vmem:[%s2379_s3 + $0x8] sm:$0xff] (!%p272_p2)  ;;  %v1574_v7 = vpack.c.bf16 (!%p272_p2), %v542_v4, %v541_v2  ;;  %v543_v14 = vld [vmem:[%s2379_s3 + $0x190] sm:$0xff] (!%p272_p2)  ;;  %v1546_v16 = vpack.c.bf16 (!%p272_p2), %v512_v13, %v511_v11 }
   0x8   : > { %v1544_v8 = vpack.c.bf16 (!%p272_p2), %v494_v6, %v493_v5  ;;  %v525_v9 = vld [vmem:[%s2379_s3 + $0x100] sm:$0xff] (!%p272_p2)  ;;  %v526_v10 = vld [vmem:[%s2379_s3 + $0x108] sm:$0xff] (!%p272_p2)  ;;  %1543 = vmatprep.subr.bf16.mxu0 (!%p272_p2), %v1542_v3  ;;  %v544_v15 = vld [vmem:[%s2379_s3 + $0x198] sm:$0xff] (!%p272_p2) }
   0x9   : > { %v1576_v12 = vpack.c.bf16 (!%p272_p2), %v526_v10, %v525_v9  ;;  %1575 = vmatprep.subr.bf16.mxu1 (!%p272_p2), %v1574_v7  ;;  %v1578_v17 = vpack.c.bf16 (!%p272_p2), %v544_v15, %v543_v14  ;;  %v495_v18 = vld [vmem:[%s2379_s3 + $0x10] sm:$0xff] (!%p272_p2)  ;;  %v496_v19 = vld [vmem:[%s2379_s3 + $0x18] sm:$0xff] (!%p272_p2)  ;;  %v513_v23 = vld [vmem:[%s2379_s3 + $0xa0] sm:$0xff] (!%p272_p2) }
   0xa   : > { %1545 = vmatpush3.bf16.msra.mxu0 (!%p272_p2), %v1544_v8  ;;  %v527_v20 = vld [vmem:[%s2379_s3 + $0x110] sm:$0xff] (!%p272_p2)  ;;  %v1548_v21 = vpack.c.bf16 (!%p272_p2), %v496_v19, %v495_v18  ;;  %v528_v22 = vld [vmem:[%s2379_s3 + $0x118] sm:$0xff] (!%p272_p2)  ;;  %v514_v24 = vld [vmem:[%s2379_s3 + $0xa8] sm:$0xff] (!%p272_p2)  ;;  %v376_v8 = vlaneseq (!%p272_p2) }
   0xb   : > { %1577 = vmatpush3.bf16.msra.mxu1 (!%p272_p2), %v1576_v12  ;;  %1547 = vmatprep.subr.bf16.mxu0 (!%p272_p2), %v1546_v16  ;;  %v1580_v25 = vpack.c.bf16 (!%p272_p2), %v528_v22, %v527_v20  ;;  %v1550_v26 = vpack.c.bf16 (!%p272_p2), %v514_v24, %v513_v23  ;;  %v545_v27 = vld [vmem:[%s2379_s3 + $0x1a0] sm:$0xff] (!%p272_p2)  ;;  %v546_v28 = vld [vmem:[%s2379_s3 + $0x1a8] sm:$0xff] (!%p272_p2)  ;;  %v515_v35 = vld [vmem:[%s2379_s3 + $0xb0] sm:$0xff] (!%p272_p2) }
   0xc   : > { %1579 = vmatprep.subr.bf16.mxu1 (!%p272_p2), %v1578_v17  ;;  %v497_v29 = vld [vmem:[%s2379_s3 + $0x20] sm:$0xff] (!%p272_p2)  ;;  %v1582_v30 = vpack.c.bf16 (!%p272_p2), %v546_v28, %v545_v27  ;;  %v498_v31 = vld [vmem:[%s2379_s3 + $0x28] sm:$0xff] (!%p272_p2)  ;;  %v516_v36 = vld [vmem:[%s2379_s3 + $0xb8] sm:$0xff] (!%p272_p2) }
   0xd   : > { %v529_v32 = vld [vmem:[%s2379_s3 + $0x120] sm:$0xff]  ;;  %v530_v33 = vld [vmem:[%s2379_s3 + $0x128] sm:$0xff]  ;;  %v1552_v34 = vpack.c.bf16 %v498_v31, %v497_v29  ;;  %v547_v37 = vld [vmem:[%s2379_s3 + $0x1b0] sm:$0xff]  ;;  %v1554_v39 = vpack.c.bf16 %v516_v36, %v515_v35  ;;  %s2387_s17 = smov (!%p1864_p3, %s1264_s17), 3  ;;  %s2389_s28 = smov (!%p335_p4, %s1785_s28), 1 }
   0xe   : > { %1549 = vmatpush3.bf16.msra.mxu0 %v1548_v21  ;;  %v1584_v38 = vpack.c.bf16 %v530_v33, %v529_v32  ;;  %v548_v40 = vld [vmem:[%s2379_s3 + $0x1b8] sm:$0xff]  ;;  %v499_v41 = vld [vmem:[%s2379_s3 + $0x30] sm:$0xff]  ;;  %v517_v46 = vld [vmem:[%s2379_s3 + $0xc0] sm:$0xff]  ;;  %s1932_s21 = sshll.u32 %s2387_s17, 4  ;;  %s1270_s12 = sshll.u32 %s2389_s28, 1 }
   0xf   : > { %1581 = vmatpush3.bf16.msra.mxu1 %v1580_v25  ;;  %1551 = vmatprep.subr.bf16.mxu0 %v1550_v26  ;;  %v500_v42 = vld [vmem:[%s2379_s3 + $0x38] sm:$0xff]  ;;  %v1586_v43 = vpack.c.bf16 %v548_v40, %v547_v37  ;;  %v531_v44 = vld [vmem:[%s2379_s3 + $0x130] sm:$0xff]  ;;  %v518_v47 = vld [vmem:[%s2379_s3 + $0xc8] sm:$0xff]  ;;  %s1956_s14 = scalar_lea.vmem %s2376_s0, %s1932_s21  ;;  %v1994_v25 = vshrl.u32 %v376_v8, 7  ;;  %s333_s16 = scalar_lea.vmem %s2381_s5, %s1932_s21 }
  0x10   : > { %1583 = vmatprep.subr.bf16.mxu1 %v1582_v30  ;;  %v532_v45 = vld [vmem:[%s2379_s3 + $0x138] sm:$0xff]  ;;  %v549_v48 = vld [vmem:[%s2379_s3 + $0x1c0] sm:$0xff]  ;;  %v550_v49 = vld [vmem:[%s2379_s3 + $0x1c8] sm:$0xff]  ;;  %v1556_v50 = vpack.c.bf16 %v500_v42, %v499_v41  ;;  %v1558_v52 = vpack.c.bf16 %v518_v47, %v517_v46  ;;  %s344_s11 = scalar_lea.vmem %s2383_s7, %s1932_s21  ;;  %s338_s18 = scalar_lea.vmem %s2382_s6, %s1270_s12 }
  0x11   : > { %v1588_v51 = vpack.c.bf16 %v532_v45, %v531_v44  ;;  %v501_v53 = vld [vmem:[%s2379_s3 + $0x40] sm:$0xff]  ;;  %v502_v54 = vld [vmem:[%s2379_s3 + $0x48] sm:$0xff]  ;;  %v1590_v56 = vpack.c.bf16 %v550_v49, %v549_v48  ;;  %v519_v58 = vld [vmem:[%s2379_s3 + $0xd0] sm:$0xff]  ;;  %vm402_vm0 = vcmp.lt.s32.totalorder %v1994_v25, 2  ;;  %vm407_vm1 = vcmp.ge.s32.totalorder %v1994_v25, 2  ;;  %s349_s20 = scalar_lea.vmem %s2384_s8, %s1270_s12 }
  0x12   : > { %1553 = vmatpush3.bf16.msra.mxu0 %v1552_v34  ;;  %v533_v55 = vld [vmem:[%s2379_s3 + $0x140] sm:$0xff]  ;;  %v534_v57 = vld [vmem:[%s2379_s3 + $0x148] sm:$0xff]  ;;  %v520_v59 = vld [vmem:[%s2379_s3 + $0xd8] sm:$0xff]  ;;  %v1560_v62 = vpack.c.bf16 %v502_v54, %v501_v53  ;;  %vm383_vm2 = vcmp.lt.s32.totalorder %v1994_v25, 3  ;;  %vm421_vm3 = vcmp.lt.s32.totalorder %v1994_v25, 1  ;;  %vm388_vm4 = vcmp.ge.s32.totalorder %v1994_v25, 3 }
  0x13   : > { %1585 = vmatpush3.bf16.msra.mxu1 %v1584_v38  ;;  %1555 = vmatprep.subr.bf16.mxu0 %v1554_v39  ;;  %v551_v60 = vld [vmem:[%s2379_s3 + $0x1d0] sm:$0xff]  ;;  %v552_v61 = vld [vmem:[%s2379_s3 + $0x1d8] sm:$0xff]  ;;  %v1592_v63 = vpack.c.bf16 %v534_v57, %v533_v55  ;;  %v1562_v0 = vpack.c.bf16 %v520_v59, %v519_v58  ;;  %v521_v6 = vld [vmem:[%s2379_s3 + $0xe0] sm:$0xff]  ;;  %vm426_vm5 = vcmp.ge.s32.totalorder %v1994_v25, 1  ;;  %vm459_vm6 = vcmp.lt.s32.totalorder %v1994_v25, 6 }
  0x14   : > { %1587 = vmatprep.subr.bf16.mxu1 %v1586_v43  ;;  %v503_v1 = vld [vmem:[%s2379_s3 + $0x50] sm:$0xff]  ;;  %v504_v2 = vld [vmem:[%s2379_s3 + $0x58] sm:$0xff]  ;;  %v1594_v4 = vpack.c.bf16 %v552_v61, %v551_v60  ;;  %v522_v7 = vld [vmem:[%s2379_s3 + $0xe8] sm:$0xff]  ;;  %vm478_vm7 = vcmp.lt.s32.totalorder %v1994_v25, 5  ;;  %vm440_vm8 = vcmp.lt.s32.totalorder %v1994_v25, 7 }
  0x15   : > { %v535_v3 = vld [vmem:[%s2379_s3 + $0x150] sm:$0xff]  ;;  %v536_v5 = vld [vmem:[%s2379_s3 + $0x158] sm:$0xff]  ;;  %v553_v9 = vld [vmem:[%s2379_s3 + $0x1e0] sm:$0xff]  ;;  %v1564_v12 = vpack.c.bf16 %v504_v2, %v503_v1  ;;  %v1566_v17 = vpack.c.bf16 %v522_v7, %v521_v6 }
  0x16   : > { %1557 = vmatpush3.bf16.msra.mxu0 %v1556_v50  ;;  %v554_v10 = vld [vmem:[%s2379_s3 + $0x1e8] sm:$0xff]  ;;  %v505_v11 = vld [vmem:[%s2379_s3 + $0x60] sm:$0xff]  ;;  %v1596_v16 = vpack.c.bf16 %v536_v5, %v535_v3  ;;  %v523_v18 = vld [vmem:[%s2379_s3 + $0xf0] sm:$0xff] }
  0x17   : > { %1589 = vmatpush3.bf16.msra.mxu1 %v1588_v51  ;;  %1559 = vmatprep.subr.bf16.mxu0 %v1558_v52  ;;  %v506_v13 = vld [vmem:[%s2379_s3 + $0x68] sm:$0xff]  ;;  %v537_v14 = vld [vmem:[%s2379_s3 + $0x160] sm:$0xff]  ;;  %v1598_v21 = vpack.c.bf16 %v554_v10, %v553_v9  ;;  %v524_v22 = vld [vmem:[%s2379_s3 + $0xf8] sm:$0xff] }
  0x18   : > { %1591 = vmatprep.subr.bf16.mxu1 %v1590_v56  ;;  %v538_v15 = vld [vmem:[%s2379_s3 + $0x168] sm:$0xff]  ;;  %v350_v19 = vld [vmem:[%s1956_s14] sm:$0xff]  ;;  %v555_v26 = vld [vmem:[%s2379_s3 + $0x1f0] sm:$0xff]  ;;  %v1568_v30 = vpack.c.bf16 %v506_v13, %v505_v11  ;;  %v1570_v33 = vpack.c.bf16 %v524_v22, %v523_v18 }
  0x19   : > { %v351_v20 = vld [vmem:[%s1956_s14 + $0x8] sm:$0xff]  ;;  %v1987_v23 = vld [vmem:[%s2377_s1] ss:$0 sm:$0xff]  ;;  %v556_v27 = vld [vmem:[%s2379_s3 + $0x1f8] sm:$0xff]  ;;  %v1600_v31 = vpack.c.bf16 %v538_v15, %v537_v14 }
  0x1a   : > { %1561 = vmatpush3.bf16.msra.mxu0 %v1560_v62  ;;  %v1992_v24 = vld [vmem:[%s2378_s2] ss:$0 sm:$0xff]  ;;  %v361_v28 = vmul.f32 %v1987_v23, %v350_v19  ;;  %v362_v29 = vmul.f32 %v1987_v23, %v351_v20  ;;  %v507_v32 = vld [vmem:[%s2379_s3 + $0x70] sm:$0xff]  ;;  %v508_v34 = vld [vmem:[%s2379_s3 + $0x78] sm:$0xff]  ;;  %v1602_v39 = vpack.c.bf16 %v556_v27, %v555_v26 }
  0x1b   : > { %1593 = vmatpush3.bf16.msra.mxu1 %v1592_v63  ;;  %1563 = vmatprep.subr.bf16.mxu0 %v1562_v0  ;;  %v539_v35 = vld [vmem:[%s2379_s3 + $0x170] sm:$0xff]  ;;  %v540_v36 = vld [vmem:[%s2379_s3 + $0x178] sm:$0xff]  ;;  %v573_v40 = vld [vmem:[%s2379_s3 + $0x280] sm:$0xff]  ;;  %v1572_v46 = vpack.c.bf16 %v508_v34, %v507_v32 }
  0x1c   : > { %1595 = vmatprep.subr.bf16.mxu1 %v1594_v4  ;;  %v2017_v37 = vadd.f32 %v1992_v24, %v361_v28  ;;  %v2020_v38 = vadd.f32 %v1992_v24, %v362_v29  ;;  %v574_v41 = vld [vmem:[%s2379_s3 + $0x288] sm:$0xff]  ;;  %v589_v44 = vld [vmem:[%s2379_s3 + $0x300] sm:$0xff]  ;;  %v1604_v47 = vpack.c.bf16 %v540_v36, %v539_v35  ;;  %v575_v57 = vld [vmem:[%s2379_s3 + $0x290] sm:$0xff] }
  0x1d   : > { %v590_v45 = vld [vmem:[%s2379_s3 + $0x308] sm:$0xff]  ;;  %v1606_v53 = vpack.c.bf16 %v574_v41, %v573_v40  ;;  %v557_v54 = vld [vmem:[%s2379_s3 + $0x200] sm:$0xff]  ;;  %v576_v58 = vld [vmem:[%s2379_s3 + $0x298] sm:$0xff] }
  0x1e   : > { %1565 = vmatpush3.bf16.msra.mxu0 %v1564_v12  ;;  %v398_v42 = vrot.slane %v2017_v37, 6  ;;  %v400_v43 = vrot.slane %v2020_v38, 6  ;;  %754 = vmatprep.mubr.f32.mxu1 %v2017_v37  ;;  %v379_v48 = vrot.slane %v2017_v37, 5  ;;  %v381_v49 = vrot.slane %v2020_v38, 5  ;;  %v558_v55 = vld [vmem:[%s2379_s3 + $0x208] sm:$0xff]  ;;  %v591_v59 = vld [vmem:[%s2379_s3 + $0x310] sm:$0xff] }
  0x1f   : > { %1597 = vmatpush3.bf16.msra.mxu1 %v1596_v16  ;;  %1567 = vmatprep.subr.bf16.mxu0 %v1566_v17  ;;  %v417_v51 = vrot.slane %v2017_v37, 7  ;;  %v419_v52 = vrot.slane %v2020_v38, 7  ;;  %v1638_v56 = vpack.c.bf16 %v590_v45, %v589_v44  ;;  %v592_v60 = vld [vmem:[%s2379_s3 + $0x318] sm:$0xff]  ;;  %v1608_v62 = vpack.c.bf16 %v558_v55, %v557_v54  ;;  %v559_v63 = vld [vmem:[%s2379_s3 + $0x210] sm:$0xff]  ;;  %v577_v4 = vld [vmem:[%s2379_s3 + $0x2a0] sm:$0xff] }
  0x20   : > { %1599 = vmatprep.subr.bf16.mxu1 %v1598_v21  ;;  %v405_v50 = vsel %vm402_vm0, %v400_v43, %v398_v42  ;;  %v386_v61 = vsel %vm383_vm2, %v381_v49, %v379_v48  ;;  %v560_v0 = vld [vmem:[%s2379_s3 + $0x218] sm:$0xff]  ;;  %v1610_v2 = vpack.c.bf16 %v576_v58, %v575_v57  ;;  %v1642_v3 = vpack.c.bf16 %v592_v60, %v591_v59  ;;  %v578_v5 = vld [vmem:[%s2379_s3 + $0x2a8] sm:$0xff]  ;;  %v593_v6 = vld [vmem:[%s2379_s3 + $0x320] sm:$0xff] }
  0x21   : > { %1277 = vmatprep.mubr.msk.f32.mxu0 %vm407_vm1, %v405_v50  ;;  %v424_v1 = vsel %vm421_vm3, %v419_v52, %v417_v51  ;;  %v1612_v7 = vpack.c.bf16 %v560_v0, %v559_v63  ;;  %v594_v8 = vld [vmem:[%s2379_s3 + $0x328] sm:$0xff]  ;;  %v403_v9 = vsel %vm402_vm0, %v398_v42, %v400_v43  ;;  %v352_v10 = vld [vmem:[%s1956_s14 + $0x10] sm:$0xff]  ;;  %v353_v11 = vld [vmem:[%s1956_s14 + $0x18] sm:$0xff]  ;;  %v384_v14 = vsel %vm383_vm2, %v379_v48, %v381_v49 }
  0x22   : > { %1569 = vmatpush3.bf16.msra.mxu0 %v1568_v30  ;;  %v561_v12 = vld [vmem:[%s2379_s3 + $0x220] sm:$0xff]  ;;  %v562_v13 = vld [vmem:[%s2379_s3 + $0x228] sm:$0xff]  ;;  %v363_v15 = vmul.f32 %v1987_v23, %v352_v10  ;;  %v364_v16 = vmul.f32 %v1987_v23, %v353_v11  ;;  %v1614_v17 = vpack.c.bf16 %v578_v5, %v577_v4  ;;  %v422_v18 = vsel %vm421_vm3, %v417_v51, %v419_v52  ;;  %v579_v20 = vld [vmem:[%s2379_s3 + $0x2b0] sm:$0xff] }
  0x23   : > { %1601 = vmatpush3.bf16.msra.mxu1 %v1600_v31  ;;  %1571 = vmatprep.subr.bf16.mxu0 %v1570_v33  ;;  %v1646_v19 = vpack.c.bf16 %v594_v8, %v593_v6  ;;  %v580_v21 = vld [vmem:[%s2379_s3 + $0x2b8] sm:$0xff]  ;;  %v1616_v26 = vpack.c.bf16 %v562_v13, %v561_v12  ;;  %v595_v27 = vld [vmem:[%s2379_s3 + $0x330] sm:$0xff]  ;;  %v581_v40 = vld [vmem:[%s2379_s3 + $0x2c0] sm:$0xff]  ;;  %v457_v48 = vrot.slane %v2020_v38, 2  ;;  %v474_v51 = vrot.slane %v2017_v37, 3 }
  0x24   : > { %1603 = vmatprep.subr.bf16.mxu1 %v1602_v39  ;;  %v2118_v22 = vadd.f32 %v1992_v24, %v363_v15  ;;  %v2121_v23 = vadd.f32 %v1992_v24, %v364_v16  ;;  %v596_v28 = vld [vmem:[%s2379_s3 + $0x338] sm:$0xff]  ;;  %v1618_v32 = vpack.c.bf16 %v580_v21, %v579_v20  ;;  %v563_v33 = vld [vmem:[%s2379_s3 + $0x230] sm:$0xff]  ;;  %v582_v41 = vld [vmem:[%s2379_s3 + $0x2c8] sm:$0xff]  ;;  %v476_v52 = vrot.slane %v2020_v38, 3 }
  0x25   : > { %v564_v34 = vld [vmem:[%s2379_s3 + $0x238] sm:$0xff]  ;;  %v1650_v39 = vpack.c.bf16 %v596_v28, %v595_v27  ;;  %v597_v43 = vld [vmem:[%s2379_s3 + $0x340] sm:$0xff]  ;;  %v598_v44 = vld [vmem:[%s2379_s3 + $0x348] sm:$0xff] }
  0x26   : > { %1573 = vmatpush3.bf16.msra.mxu0 %v1572_v46  ;;  %v399_v29 = vrot.slane %v2118_v22, 6  ;;  %v401_v30 = vrot.slane %v2121_v23, 6  ;;  %v380_v24 = vrot.slane %v2118_v22, 5  ;;  %v382_v31 = vrot.slane %v2121_v23, 5  ;;  %v565_v54 = vld [vmem:[%s2379_s3 + $0x240] sm:$0xff]  ;;  %v566_v55 = vld [vmem:[%s2379_s3 + $0x248] sm:$0xff] }
  0x27   : > { %1605 = vmatpush3.bf16.msra.mxu1 %v1604_v47  ;;  %1607 = vmatprep.subr.bf16.mxu0 %v1606_v53  ;;  %v418_v35 = vrot.slane %v2118_v22, 7  ;;  %v420_v36 = vrot.slane %v2121_v23, 7  ;;  %v455_v47 = vrot.slane %v2017_v37, 2  ;;  %v1620_v49 = vpack.c.bf16 %v564_v34, %v563_v33  ;;  %v583_v58 = vld [vmem:[%s2379_s3 + $0x2d0] sm:$0xff]  ;;  %v584_v59 = vld [vmem:[%s2379_s3 + $0x2d8] sm:$0xff]  ;;  %v585_v6 = vld [vmem:[%s2379_s3 + $0x2e0] sm:$0xff] }
  0x28   : > { %1639 = vmatprep.subr.bf16.mxu1 %v1638_v56  ;;  %v406_v42 = vsel %vm402_vm0, %v401_v30, %v399_v29  ;;  %v387_v45 = vsel %vm383_vm2, %v382_v31, %v380_v24  ;;  %v404_v50 = vsel %vm402_vm0, %v399_v29, %v401_v30  ;;  %v1622_v53 = vpack.c.bf16 %v582_v41, %v581_v40  ;;  %v599_v60 = vld [vmem:[%s2379_s3 + $0x350] sm:$0xff]  ;;  %v568_v4 = vld [vmem:[%s2379_s3 + $0x258] sm:$0xff]  ;;  %v601_v8 = vld [vmem:[%s2379_s3 + $0x360] sm:$0xff] }
  0x29   : > { %1278 = vmatmul.mubr.msk.f32.vlgmr.msra.gmra.mrb[0].mxu0 %vm388_vm4, %v386_v61  ;;  %v425_v46 = vsel %vm421_vm3, %v420_v36, %v418_v35  ;;  %v1654_v57 = vpack.c.bf16 %v598_v44, %v597_v43  ;;  %v600_v61 = vld [vmem:[%s2379_s3 + $0x358] sm:$0xff]  ;;  %v1624_v63 = vpack.c.bf16 %v566_v55, %v565_v54  ;;  %v460_v0 = vsel %vm459_vm6, %v455_v47, %v457_v48  ;;  %v569_v12 = vld [vmem:[%s2379_s3 + $0x260] sm:$0xff]  ;;  %v570_v13 = vld [vmem:[%s2379_s3 + $0x268] sm:$0xff] }
  0x2a   : > { %1281 = vmatmul.mubr.msk.f32.vlgmr.msra.gmra.mrb[0].mxu1 %vm426_vm5, %v424_v1  ;;  %1609 = vmatpush3.bf16.msra.mxu0 %v1608_v62  ;;  %v385_v62 = vsel %vm383_vm2, %v380_v24, %v382_v31  ;;  %v479_v1 = vsel %vm478_vm7, %v474_v51, %v476_v52  ;;  %v1658_v5 = vpack.c.bf16 %v600_v61, %v599_v60  ;;  %v587_v15 = vld [vmem:[%s2379_s3 + $0x2f0] sm:$0xff]  ;;  %v588_v16 = vld [vmem:[%s2379_s3 + $0x2f8] sm:$0xff]  ;;  %v974_v28 = vld [vmem:[%s2380_s4] sm:$0xff]  ;;  %v436_v24 = vrot.slane %v2017_v37, 1 }
  0x2b   : > { %1641 = vmatpush3.bf16.msra.mxu1 %v1638_v56  ;;  %1611 = vmatprep.subr.bf16.mxu0 %v1610_v2  ;;  %v423_v56 = vsel %vm421_vm3, %v418_v35, %v420_v36  ;;  %v1626_v2 = vpack.c.bf16 %v584_v59, %v583_v58  ;;  %v1634_v20 = vpack.c.bf16 %v588_v16, %v587_v15  ;;  %v571_v21 = vld [vmem:[%s2379_s3 + $0x270] sm:$0xff]  ;;  %v975_v29 = vld [vmem:[%s2380_s4 + $0x8] sm:$0xff]  ;;  %v438_v31 = vrot.slane %v2020_v38, 1  ;;  %v977_v35 = vld [vmem:[%s2380_s4 + $0x18] sm:$0xff] }
  0x2c   : > { %1643 = vmatprep.subr.bf16.mxu1 %v1642_v3  ;;  %674 = vmatprep.mubr.f32.mxu0 %v403_v9  ;;  %v602_v9 = vld [vmem:[%s2379_s3 + $0x368] sm:$0xff]  ;;  %v378_v33 = vadd.s32 8, %v1994_v25  ;;  %v976_v34 = vld [vmem:[%s2380_s4 + $0x10] sm:$0xff]  ;;  %v477_v40 = vrot.slane %v2121_v23, 3  ;;  %v481_v41 = vsel %vm478_vm7, %v476_v52, %v474_v51  ;;  %v458_v43 = vrot.slane %v2121_v23, 2  ;;  %v981_v55 = vld [vmem:[%s2380_s4 + $0x38] sm:$0xff] }
  0x2d   : > { %759 = vmatprep.mubr.f32.mxu1 %v2020_v38  ;;  %675 = vmatmul.mubr.f32.gmra.mrb[2].mxu0 %v384_v14  ;;  %v1662_v14 = vpack.c.bf16 %v602_v9, %v601_v8  ;;  %v441_v36 = vsel %vm440_vm8, %v436_v24, %v438_v31  ;;  %v462_v44 = vsel %vm459_vm6, %v457_v48, %v455_v47  ;;  %v437_v47 = vrot.slane %v2118_v22, 1  ;;  %v980_v54 = vld [vmem:[%s2380_s4 + $0x30] sm:$0xff]  ;;  %v982_v60 = vld [vmem:[%s2380_s4 + $0x40] sm:$0xff]  ;;  %v983_v61 = vld [vmem:[%s2380_s4 + $0x48] sm:$0xff] }
  0x2e   : > { %1613 = vmatpush3.bf16.msra.mxu0 %v1612_v7  ;;  %760 = vmatmul.mubr.f32.gmra.mrb[2].mxu1 %v422_v18  ;;  %v586_v7 = vld [vmem:[%s2379_s3 + $0x2e8] sm:$0xff]  ;;  %v604_v18 = vld [vmem:[%s2379_s3 + $0x378] sm:$0xff]  ;;  %vm484_vm9 = vcmp.lt.s32.totalorder %v378_v33, 13  ;;  %vm465_vm10 = vcmp.lt.s32.totalorder %v378_v33, 14  ;;  %vm446_vm11 = vcmp.lt.s32.totalorder %v378_v33, 15  ;;  %v439_v48 = vrot.slane %v2121_v23, 1 }
  0x2f   : > { %1645 = vmatpush3.bf16.msra.mxu1 %v1642_v3  ;;  %1615 = vmatprep.subr.bf16.mxu0 %v1614_v17  ;;  %v567_v3 = vld [vmem:[%s2379_s3 + $0x250] sm:$0xff]  ;;  %v1630_v11 = vpack.c.bf16 %v586_v7, %v585_v6  ;;  %v1682_v59 = vpack.c.bf16 %v981_v55, %v980_v54 }
  0x30   : > { %1647 = vmatprep.subr.bf16.mxu1 %v1646_v19  ;;  %764 = vmatprep.mubr.f32.mxu1 %v2118_v22  ;;  %v1628_v10 = vpack.c.bf16 %v568_v4, %v567_v3  ;;  %v603_v17 = vld [vmem:[%s2379_s3 + $0x370] sm:$0xff]  ;;  %v989_v4 = vld [vmem:[%s2380_s4 + $0x78] sm:$0xff] }
  0x31   : > { %1279 = vmatprep.mubr.msk.f32.mxu0 %vm407_vm1, %v406_v42  ;;  %v1666_v27 = vpack.c.bf16 %v604_v18, %v603_v17  ;;  %v456_v42 = vrot.slane %v2118_v22, 2 }
  0x32   : > { %1617 = vmatpush3.bf16.msra.mxu0 %v1616_v26  ;;  %1282 = vmatmul.mubr.msk.f32.gmra.mrb[4].mxu1 %vm426_vm5, %v425_v46  ;;  %v572_v26 = vld [vmem:[%s2379_s3 + $0x278] sm:$0xff]  ;;  %v978_v46 = vld [vmem:[%s2380_s4 + $0x20] sm:$0xff] }
  0x33   : > { %1649 = vmatpush3.bf16.msra.mxu1 %v1646_v19  ;;  %1619 = vmatprep.subr.bf16.mxu0 %v1618_v32  ;;  %v1632_v19 = vpack.c.bf16 %v570_v13, %v569_v12  ;;  %v1636_v30 = vpack.c.bf16 %v572_v26, %v571_v21  ;;  %v1670_v32 = vpack.c.bf16 %v975_v29, %v974_v28 }
  0x34   : > { %1651 = vmatprep.subr.bf16.mxu1 %v1650_v39  ;;  %1280 = vmatmul.mubr.msk.f32.gmra.mrb[4].mxu0 %vm388_vm4, %v387_v45  ;;  %v1674_v45 = vpack.c.bf16 %v977_v35, %v976_v34  ;;  %v461_v52 = vsel %vm459_vm6, %v456_v42, %v458_v43  ;;  %v463_v58 = vsel %vm459_vm6, %v458_v43, %v456_v42 }
  0x35   : > { %684 = vmatprep.mubr.f32.mxu0 %v404_v50  ;;  %769 = vmatprep.mubr.f32.mxu1 %v2121_v23  ;;  %v443_v50 = vsel %vm440_vm8, %v438_v31, %v436_v24 }
  0x36   : > { %1621 = vmatpush3.bf16.msra.mxu0 %v1620_v49  ;;  %770 = vmatmul.mubr.f32.gmra.mrb[6].mxu1 %v423_v56  ;;  %v979_v49 = vld [vmem:[%s2380_s4 + $0x28] sm:$0xff] }
  0x37   : > { %1653 = vmatpush3.bf16.msra.mxu1 %v1650_v39  ;;  %1623 = vmatprep.subr.bf16.mxu0 %v1622_v53  ;;  %v475_v39 = vrot.slane %v2118_v22, 3  ;;  %v1678_v53 = vpack.c.bf16 %v979_v49, %v978_v46 }
  0x38   : > { %1655 = vmatprep.subr.bf16.mxu1 %v1654_v57  ;;  %685 = vmatmul.mubr.f32.gmra.mrb[6].mxu0 %v385_v62  ;;  %v444_v62 = vsel %vm440_vm8, %v439_v48, %v437_v47 }
  0x39   : > { %839 = vmatprep.mubr.f32.mxu0 %v460_v0  ;;  %1498 = vmatprep.mubr.f32.mxu1 %v479_v1  ;;  %v480_v51 = vsel %vm478_vm7, %v475_v39, %v477_v40  ;;  %v482_v56 = vsel %vm478_vm7, %v477_v40, %v475_v39  ;;  %v984_v0 = vld [vmem:[%s2380_s4 + $0x50] sm:$0xff]  ;;  %v985_v1 = vld [vmem:[%s2380_s4 + $0x58] sm:$0xff] }
  0x3a   : > { %1625 = vmatpush3.bf16.msra.mxu0 %v1624_v63  ;;  %v1686_v63 = vpack.c.bf16 %v983_v61, %v982_v60  ;;  %v1690_v25 = vpack.c.bf16 %v985_v1, %v984_v0 }
  0x3b   : > { %1657 = vmatpush3.bf16.msra.mxu1 %v1654_v57  ;;  %1627 = vmatprep.subr.bf16.mxu0 %v1626_v2  ;;  %v442_v57 = vsel %vm440_vm8, %v437_v47, %v439_v48  ;;  %v987_v2 = vld [vmem:[%s2380_s4 + $0x68] sm:$0xff] }
  0x3c   : > { %1659 = vmatprep.subr.bf16.mxu1 %v1658_v5 }
  0x3e   : > { %1629 = vmatpush3.bf16.msra.mxu0 %v1628_v10 }
  0x3f   : > { %1661 = vmatpush3.bf16.msra.mxu1 %v1658_v5  ;;  %1631 = vmatprep.subr.bf16.mxu0 %v1630_v11 }
  0x40   : > { %1663 = vmatprep.subr.bf16.mxu1 %v1662_v14 }
  0x42   : > { %1633 = vmatpush3.bf16.msra.mxu0 %v1632_v19 }
  0x43   : > { %1665 = vmatpush3.bf16.msra.mxu1 %v1662_v14  ;;  %1635 = vmatprep.subr.bf16.mxu0 %v1634_v20 }
  0x44   : > { %1667 = vmatprep.subr.bf16.mxu1 %v1666_v27 }
  0x46   : > { %1637 = vmatpush3.bf16.msra.mxu0 %v1636_v30 }
  0x47   : > { %1669 = vmatpush3.bf16.msra.mxu1 %v1666_v27  ;;  %1671 = vmatprep.subr.bf16.mxu0 %v1670_v32 }
  0x48   : > { %1702 = vmatprep.subr.bf16.mxu1 %v1670_v32 }
  0x49   : > { %840 = vmatmul.mubr.f32.vlgmr.msra.gmra.mrb[8].mxu0 %v441_v36 }
  0x4a   : > { %1673 = vmatpush3.bf16.msra.mxu0 %v1670_v32  ;;  %1499 = vmatmul.mubr.msk.f32.vlgmr.msra.gmra.mrb[8].mxu1 %vm484_vm9, %v481_v41 }
  0x4b   : > { %1710 = vmatpush3.bf16.msra.mxu1 %v1670_v32  ;;  %1283 = vmatprep.mubr.msk.f32.mxu0 %vm465_vm10, %v462_v44 }
  0x4c   : > { %1675 = vmatprep.subr.bf16.mxu0 %v1674_v45  ;;  %1703 = vmatprep.subr.bf16.mxu1 %v1674_v45 }
  0x4d   : > { %1284 = vmatmul.mubr.msk.f32.gmra.mrb[10].mxu0 %vm446_vm11, %v443_v50  ;;  %1501 = vmatprep.mubr.f32.mxu1 %v480_v51 }
  0x4e   : > { %1677 = vmatpush3.bf16.msra.mxu0 %v1674_v45  ;;  %849 = vmatprep.mubr.f32.mxu0 %v461_v52 }
  0x4f   : > { %1711 = vmatpush3.bf16.msra.mxu1 %v1674_v45  ;;  %1679 = vmatprep.subr.bf16.mxu0 %v1678_v53 }
  0x50   : > { %1704 = vmatprep.subr.bf16.mxu1 %v1678_v53  ;;  %1502 = vmatmul.mubr.msk.f32.gmra.mrb[10].mxu1 %vm484_vm9, %v482_v56 }
  0x51   : > { %850 = vmatmul.mubr.f32.gmra.mrb[12].mxu0 %v442_v57  ;;  %1539 = vmatprep.mubr.f32.mxu1 %v2118_v22  ;;  %v986_v22 = vld [vmem:[%s2380_s4 + $0x60] sm:$0xff] }
  0x52   : > { %1681 = vmatpush3.bf16.msra.mxu0 %v1678_v53  ;;  %1285 = vmatprep.mubr.msk.f32.mxu0 %vm465_vm10, %v463_v58  ;;  %v1694_v3 = vpack.c.bf16 %v987_v2, %v986_v22 }
  0x53   : > { %1712 = vmatpush3.bf16.msra.mxu1 %v1678_v53  ;;  %1683 = vmatprep.subr.bf16.mxu0 %v1682_v59 }
  0x54   : > { %1705 = vmatprep.subr.bf16.mxu1 %v1682_v59 }
  0x55   : > { %1286 = vmatmul.mubr.msk.f32.gmra.mrb[14].mxu0 %vm446_vm11, %v444_v62 }
  0x56   : > { %1685 = vmatpush3.bf16.msra.mxu0 %v1682_v59  ;;  %1536 = vmatprep.mubr.f32.mxu0 %v2017_v37  ;;  %v988_v37 = vld [vmem:[%s2380_s4 + $0x70] sm:$0xff] }
  0x57   : > { %1713 = vmatpush3.bf16.msra.mxu1 %v1682_v59  ;;  %1687 = vmatprep.subr.bf16.mxu0 %v1686_v63  ;;  %v1698_v5 = vpack.c.bf16 %v989_v4, %v988_v37 }
  0x58   : > { %1706 = vmatprep.subr.bf16.mxu1 %v1686_v63 }
  0x5a   : > { %1689 = vmatpush3.bf16.msra.mxu0 %v1686_v63 }
  0x5b   : > { %1714 = vmatpush3.bf16.msra.mxu1 %v1686_v63  ;;  %1691 = vmatprep.subr.bf16.mxu0 %v1690_v25 }
  0x5c   : > { %1707 = vmatprep.subr.bf16.mxu1 %v1690_v25 }
  0x5e   : > { %1693 = vmatpush3.bf16.msra.mxu0 %v1690_v25 }
  0x5f   : > { %1715 = vmatpush3.bf16.msra.mxu1 %v1690_v25  ;;  %1695 = vmatprep.subr.bf16.mxu0 %v1694_v3 }
  0x60   : > { %1708 = vmatprep.subr.bf16.mxu1 %v1694_v3 }
  0x62   : > { %1697 = vmatpush3.bf16.msra.mxu0 %v1694_v3 }
  0x63   : > { %1716 = vmatpush3.bf16.msra.mxu1 %v1694_v3  ;;  %1699 = vmatprep.subr.bf16.mxu0 %v1698_v5 }
  0x64   : > { %1709 = vmatprep.subr.bf16.mxu1 %v1698_v5 }
  0x66   : > { %1701 = vmatpush3.bf16.msra.mxu0 %v1698_v5 }
  0x67   : > { %1717 = vmatpush3.bf16.msra.mxu1 %v1698_v5 }
  0x69   : > { %1537 = vmatmul.mubr.f32.vlgmr.msra.gmra.mrb[16].mxu0 %v2020_v38 }
  0x6a   : > { %1540 = vmatmul.mubr.f32.vlgmr.msra.gmra.mrb[12].mxu1 %v2121_v23 }
  0xfc   : > { %v1326_v6 = vpop.f32.mrb[0].mxu0 }
  0xfd   : > { %v1370_v7 = vpop.f32.mrb[0].mxu1  ;;  %v1327_v8 = vpop.f32.mrb[1].mxu0 }
  0xfe   : > { %v1328_v9 = vadd.f32 %v1327_v8, %v1326_v6  ;;  %v1371_v10 = vpop.f32.mrb[1].mxu1 }
  0xff   : > { %v1372_v11 = vadd.f32 %v1371_v10, %v1370_v7 }
 0x100   : > { %v1329_v12 = vpop.f32.mrb[2].mxu0 }
 0x101   : > { %v757_v13 = vadd.f32 %v1372_v11, %v1328_v9  ;;  %v1373_v14 = vpop.f32.mrb[2].mxu1  ;;  %v1330_v15 = vpop.f32.mrb[3].mxu0 }
 0x102   : > { %v1331_v16 = vadd.f32 %v1330_v15, %v1329_v12  ;;  %v1374_v17 = vpop.f32.mrb[3].mxu1 }
 0x103   : > { %v1375_v18 = vadd.f32 %v1374_v17, %v1373_v14 }
 0x105   : > { %v762_v19 = vadd.f32 %v1375_v18, %v1331_v16  ;;  %v1376_v20 = vpop.f32.mrb[4].mxu1 }
 0x106   : > { %v1377_v21 = vpop.f32.mrb[5].mxu1 }
 0x107   : > { %v1332_v26 = vpop.f32.mrb[4].mxu0  ;;  %v1378_v38 = vadd.f32 %v1377_v21, %v1376_v20 }
 0x108   : > { %v1333_v27 = vpop.f32.mrb[5].mxu0 }
 0x109   : > { %v1334_v23 = vadd.f32 %v1333_v27, %v1332_v26  ;;  %v1379_v28 = vpop.f32.mrb[6].mxu1 }
 0x10a   : > { %v1380_v29 = vpop.f32.mrb[7].mxu1 }
 0x10b   : > { %v767_v30 = vadd.f32 %v1378_v38, %v1334_v23  ;;  %v1335_v24 = vpop.f32.mrb[6].mxu0  ;;  %v1381_v31 = vadd.f32 %v1380_v29, %v1379_v28 }
 0x10c   : > { %v1336_v32 = vpop.f32.mrb[7].mxu0 }
 0x10d   : > { %v1337_v33 = vadd.f32 %v1336_v32, %v1335_v24 }
 0x10f   : > { %v772_v34 = vadd.f32 %v1381_v31, %v1337_v33 }
 0x11c   : > { %v1414_v35 = vpop.f32.mrb[8].mxu0 }
 0x11d   : > { %v1415_v36 = vpop.f32.mrb[9].mxu0  ;;  %v1500_v39 = vpop.f32.mrb[8].mxu1 }
 0x11e   : > { %v1416_v40 = vadd.f32 %v1415_v36, %v1414_v35  ;;  %v926_v41 = vpop.f32.mrb[9].mxu1 }
 0x120   : > { %v842_v42 = vadd.f32 %v1416_v40, %v757_v13  ;;  %v1417_v43 = vpop.f32.mrb[10].mxu0 }
 0x121   : > { %v1418_v44 = vpop.f32.mrb[11].mxu0 }
 0x122   : > { %v927_v45 = vadd.f32 %v926_v41, %v842_v42  ;;  %v1419_v46 = vadd.f32 %v1418_v44, %v1417_v43 }
 0x123   : > { %v1503_v49 = vpop.f32.mrb[10].mxu1 }
 0x124   : > { %945 = vst [vmem:[%s333_s16] sm:$0xff] %v927_v45  ;;  %v847_v50 = vadd.f32 %v1419_v46, %v762_v19  ;;  %v1420_v47 = vpop.f32.mrb[12].mxu0  ;;  %v936_v48 = vpop.f32.mrb[11].mxu1  ;;  %v958_v54 = vmul.f32 %v927_v45, %v927_v45 }
 0x125   : > { %v1421_v51 = vpop.f32.mrb[13].mxu0 }
 0x126   : > { %v932_v52 = vadd.f32 %v1500_v39, %v847_v50  ;;  %v1422_v53 = vadd.f32 %v1421_v51, %v1420_v47 }
 0x128   : > { %946 = vst [vmem:[%s333_s16 + $0x8] sm:$0xff] %v932_v52  ;;  %v959_v55 = vmul.f32 %v932_v52, %v932_v52  ;;  %v1423_v56 = vpop.f32.mrb[14].mxu0  ;;  %v852_v57 = vadd.f32 %v1422_v53, %v767_v30  ;;  %v949_v58 = vadd.f32 %v932_v52, %v927_v45 }
 0x129   : > { %v1424_v59 = vpop.f32.mrb[15].mxu0 }
 0x12a   : > { %v1425_v60 = vadd.f32 %v1424_v59, %v1423_v56  ;;  %v937_v61 = vadd.f32 %v936_v48, %v852_v57  ;;  %v962_v62 = vadd.f32 %v959_v55, %v958_v54 }
 0x12c   : > { %v857_v63 = vadd.f32 %v1425_v60, %v772_v34  ;;  %947 = vst [vmem:[%s333_s16 + $0x10] sm:$0xff] %v937_v61  ;;  %v950_v0 = vadd.f32 %v949_v58, %v937_v61  ;;  %v960_v1 = vmul.f32 %v937_v61, %v937_v61 }
 0x12e   : > { %v942_v25 = vadd.f32 %v1503_v49, %v857_v63  ;;  %v963_v22 = vadd.f32 %v962_v62, %v960_v1 }
 0x130   : > { %948 = vst [vmem:[%s333_s16 + $0x18] sm:$0xff] %v942_v25  ;;  %v961_v2 = vmul.f32 %v942_v25, %v942_v25  ;;  %v951_v3 = vadd.f32 %v950_v0, %v942_v25 }
 0x132   : > { %v952_v37 = vrot.slane %v951_v3, 4  ;;  %v964_v4 = vadd.f32 %v963_v22, %v961_v2 }
 0x134   : > { %v953_v5 = vadd.f32 %v952_v37, %v951_v3  ;;  %v965_v6 = vrot.slane %v964_v4, 4 }
 0x136   : > { %v954_v7 = vrot.slane %v953_v5, 2  ;;  %v966_v8 = vadd.f32 %v965_v6, %v964_v4 }
 0x138   : > { %v955_v9 = vadd.f32 %v954_v7, %v953_v5  ;;  %v967_v10 = vrot.slane %v966_v8, 2 }
 0x13a   : > { %v956_v11 = vrot.slane %v955_v9, 1  ;;  %v968_v12 = vadd.f32 %v967_v10, %v966_v8 }
 0x13c   : > { %v969_v13 = vrot.slane %v968_v12, 1  ;;  %v1538_v14 = vpop.f32.mrb[16].mxu0  ;;  %v957_v18 = vadd.f32 %v956_v11, %v955_v9 }
 0x13d   : > { %1076 = vst [vmem:[%s344_s11 + $0x8] sm:$0xff] %v1538_v14  ;;  %v1089_v15 = vmul.f32 %v1538_v14, %v1538_v14  ;;  %v1056_v16 = vpop.f32.mrb[17].mxu0  ;;  %v1541_v17 = vpop.f32.mrb[12].mxu1 }
 0x13e   : > { %v970_v19 = vadd.f32 %v969_v13, %v968_v12  ;;  %1075 = vst [vmem:[%s344_s11] sm:$0xff] %v1056_v16  ;;  %v1079_v20 = vadd.f32 %v1538_v14, %v1056_v16  ;;  %v1088_v21 = vmul.f32 %v1056_v16, %v1056_v16  ;;  %1078 = vst [vmem:[%s344_s11 + $0x18] sm:$0xff] %v1541_v17  ;;  %v1066_v26 = vpop.f32.mrb[13].mxu1 }
 0x13f   : > { %1077 = vst [vmem:[%s344_s11 + $0x10] sm:$0xff] %v1066_v26  ;;  %v1090_v38 = vmul.f32 %v1066_v26, %v1066_v26  ;;  %v1091_v29 = vmul.f32 %v1541_v17, %v1541_v17 }
 0x140   : > { %v1092_v27 = vadd.f32 %v1089_v15, %v1088_v21  ;;  %v972_v23 = vsel %vm971_vm12, %v957_v18, %v970_v19  ;;  %v1080_v28 = vadd.f32 %v1079_v20, %v1066_v26 }
 0x141   : > { %973 = vst [vmem:[%s338_s18] sm:$0x3] %v972_v23 }
 0x142   : > { %v1081_v30 = vadd.f32 %v1541_v17, %v1080_v28  ;;  %v1093_v24 = vadd.f32 %v1092_v27, %v1090_v38 }
 0x144   : > { %v1082_v31 = vrot.slane %v1081_v30, 4  ;;  %v1094_v32 = vadd.f32 %v1093_v24, %v1091_v29 }
 0x146   : > { %v1083_v33 = vadd.f32 %v1082_v31, %v1081_v30  ;;  %v1095_v34 = vrot.slane %v1094_v32, 4 }
 0x148   : > { %v1084_v35 = vrot.slane %v1083_v33, 2  ;;  %v1096_v36 = vadd.f32 %v1095_v34, %v1094_v32 }
 0x14a   : > { %v1085_v39 = vadd.f32 %v1084_v35, %v1083_v33  ;;  %v1097_v40 = vrot.slane %v1096_v36, 2 }
 0x14c   : > { %v1086_v41 = vrot.slane %v1085_v39, 1  ;;  %v1098_v42 = vadd.f32 %v1097_v40, %v1096_v36 }
 0x14e   : > { %v1099_v43 = vrot.slane %v1098_v42, 1  ;;  %v1087_v44 = vadd.f32 %v1086_v41, %v1085_v39 }
 0x150   : > { %v1100_v45 = vadd.f32 %v1099_v43, %v1098_v42 }
 0x152   : > { %v1101_v46 = vsel %vm971_vm12, %v1087_v44, %v1100_v45 }
 0x153   : > { %1102 = vst [vmem:[%s349_s20] sm:$0x3] %v1101_v46 }
 0x154 PF: > { %s19_s27 = sadd.s32 1, %s1732_s27  }
 0x155   : > { %p16_p5 = scmp.ge.s32.totalorder %s19_s27, 4  }
 0x157   :  { %18 = sbr.rel (!%p16_p5) target bundleno = 1 (0x1), region = 106 }

</bundles_post_ra>
